<compile_context>
chip_gen: v7x
topology: tpu7x:2x2x1
jax: 0.10.0
libtpu: 0.0.40
codegen_flags: <defaults>
</compile_context>

<pallas_src>
import jax
import jax.numpy as jnp
import numpy as np
from jax.experimental import pallas as pl
from jax.experimental.pallas import tpu as pltpu

# ----------------------- config (small, BERT-like) -----------------------
B = 2          # batch
S = 8          # sequence length
H = 32         # hidden size
NH = 2         # attention heads
DH = H // NH   # head dim
FFN = 64       # intermediate size
V = 256        # vocab size
NLAYERS = 2
LN_EPS = 1e-12
DTYPE = jnp.float32
MXU_DTYPE = jnp.bfloat16   # matmul operand dtype (accumulation stays f32)
BS = B * S                 # flattened token rows


# --------------------------- in-kernel helpers ---------------------------
def _gelu(x):
    # TODO(synk): BERT uses exact erf-GELU; tanh approximation used here for
    # guaranteed Mosaic lowering (EUP tanh).
    c = jnp.float32(0.7978845608028654)  # sqrt(2/pi)
    return 0.5 * x * (1.0 + jnp.tanh(c * (x + 0.044715 * x * x * x)))


def _layernorm(x, g, b):
    mu = jnp.mean(x, axis=-1, keepdims=True)
    var = jnp.mean((x - mu) ** 2, axis=-1, keepdims=True)
    return (x - mu) * jax.lax.rsqrt(var + LN_EPS) * g + b


def _mm(a, w):
    """MXU matmul: bf16 operands (weights pre-cast), f32 accumulation."""
    return jnp.dot(a.astype(MXU_DTYPE), w.astype(MXU_DTYPE),
                   preferred_element_type=jnp.float32)


def _mm_t(a, w):
    """a @ w.T without materializing the transpose (contract last dims)."""
    return jax.lax.dot_general(
        a.astype(MXU_DTYPE), w.astype(MXU_DTYPE),
        dimension_numbers=(((1,), (1,)), ((), ())),
        preferred_element_type=jnp.float32)


# ------------------------------ fused kernel ------------------------------
def _encoder_mlm_kernel(
        emb_ref, mask2d_ref, eln_g_ref, eln_b_ref,
        wqkv_ref, bqkv_ref, wo_ref, bo_ref, ln1_g_ref, ln1_b_ref,
        w1_ref, b1_ref, w2_ref, b2_ref, ln2_g_ref, ln2_b_ref,
        mlm_wt_ref, mlm_bt_ref, mlm_ln_g_ref, mlm_ln_b_ref,
        word_emb_ref, dec_b_ref,
        h_ref, logits_ref):
    # Embedding LayerNorm once; hidden state x stays in vregs/VMEM throughout.
    x = _layernorm(emb_ref[...].astype(jnp.float32),
                   eln_g_ref[...], eln_b_ref[...])              # [BS, H]
    add_mask = mask2d_ref[...]                                  # [BS, BS] (hoisted)

    for l in range(NLAYERS):                                    # static unroll
        # ---------------- self-attention (fused QKV) ----------------------
        qkv = _mm(x, wqkv_ref[l]) + bqkv_ref[l]                 # [BS, 3H], q pre-scaled
        wo = wo_ref[l]                                          # [H, H]
        attn_acc = jnp.zeros((BS, H), jnp.float32)
        for hd in range(NH):                                    # static unroll (NH=2)
            qh = qkv[:, 0 * H + hd * DH: 0 * H + (hd + 1) * DH]   # [BS, DH]
            kh = qkv[:, 1 * H + hd * DH: 1 * H + (hd + 1) * DH]
            vh = qkv[:, 2 * H + hd * DH: 2 * H + (hd + 1) * DH]
            s = _mm_t(qh, kh) + add_mask                        # [BS, BS] block-diag masked
            s = s - jnp.max(s, axis=-1, keepdims=True)
            p = jnp.exp(s)
            p = p * pl.reciprocal(jnp.sum(p, axis=-1, keepdims=True), approx=True)
            ctx_h = _mm(p, vh)                                  # [BS, DH]
            # concat-free head merge: accumulate ctx_h @ Wo[hd*DH:(hd+1)*DH, :]
            attn_acc = attn_acc + _mm(ctx_h, wo[hd * DH:(hd + 1) * DH, :])
        attn_out = attn_acc + bo_ref[l]
        x = _layernorm(attn_out + x, ln1_g_ref[l], ln1_b_ref[l])   # fused resid+LN

        # ---------------- feed-forward (gelu + fused resid+LN) ------------
        inter = _gelu(_mm(x, w1_ref[l]) + b1_ref[l])
        ffn_out = _mm(inter, w2_ref[l]) + b2_ref[l]
        x = _layernorm(ffn_out + x, ln2_g_ref[l], ln2_b_ref[l])

    h_ref[...] = x.astype(h_ref.dtype)

    # ---------------- MLM head (transform + LN + tied decoder) ------------
    t = _gelu(_mm(x, mlm_wt_ref[...]) + mlm_bt_ref[...])
    t = _layernorm(t, mlm_ln_g_ref[...], mlm_ln_b_ref[...])
    logits = _mm_t(t, word_emb_ref[...]) + dec_b_ref[...]       # [BS, V] lane-dense
    logits_ref[...] = logits.astype(logits_ref.dtype)


def fused_forward(packed, emb_flat, mask2d):
    """emb_flat: [B*S, H] f32 (sum of embeddings, pre-LN);
    mask2d: [B*S, B*S] f32 block-diagonal additive attention mask."""
    args = (emb_flat, mask2d,
            packed["emb_ln_g"], packed["emb_ln_b"],
            packed["Wqkv"], packed["bqkv"], packed["Wo"], packed["bo"],
            packed["ln1_g"], packed["ln1_b"],
            packed["W1"], packed["b1"], packed["W2"], packed["b2"],
            packed["ln2_g"], packed["ln2_b"],
            packed["mlm_Wt"], packed["mlm_bt"],
            packed["mlm_ln_g"], packed["mlm_ln_b"],
            packed["word_emb_bf16"], packed["mlm_dec_b"])

    # Advisory cost estimate so XLA schedules surrounding gathers correctly.
    per_layer_flops = (2 * BS * H * 3 * H          # fused QKV
                       + NH * 2 * 2 * BS * BS * DH  # scores + ctx
                       + 2 * BS * H * H             # output projection
                       + 2 * 2 * BS * H * FFN)      # FFN
    mlm_flops = 2 * BS * H * H + 2 * BS * H * V
    flops = NLAYERS * per_layer_flops + mlm_flops
    transcendentals = NLAYERS * (NH * BS * BS + BS * FFN) + BS * H
    out_bytes = BS * H * 4 + BS * V * 4
    in_bytes = sum(int(np.prod(a.shape)) * int(np.dtype(a.dtype).itemsize)
                   for a in args)
    cost = pl.CostEstimate(flops=int(flops),
                           transcendentals=int(transcendentals),
                           bytes_accessed=int(in_bytes + out_bytes))

    vmem = pl.BlockSpec(memory_space=pltpu.MemorySpace.VMEM)
    h_out, logits = pl.pallas_call(
        _encoder_mlm_kernel,
        out_shape=[jax.ShapeDtypeStruct((BS, H), DTYPE),
                   jax.ShapeDtypeStruct((BS, V), DTYPE)],
        in_specs=[vmem] * len(args),
        out_specs=[vmem, vmem],
        cost_estimate=cost,
    )(*args)
    return h_out, logits


# ----------------------------- parameter init -----------------------------
def _normal(key, shape, std=0.02):
    return (jax.random.normal(key, shape, dtype=jnp.float32) * std).astype(DTYPE)


def init_params(key):
    keys = iter(jax.random.split(key, 64))
    p = {
        "word_emb": _normal(next(keys), (V, H)),
        "pos_emb": _normal(next(keys), (S, H)),
        "type_emb": _normal(next(keys), (2, H)),
        "emb_ln_g": jnp.ones((H,), DTYPE),
        "emb_ln_b": jnp.zeros((H,), DTYPE),
        "layers": [],
    }
    for _ in range(NLAYERS):
        layer = {
            "Wq": _normal(next(keys), (H, H)), "bq": jnp.zeros((H,), DTYPE),
            "Wk": _normal(next(keys), (H, H)), "bk": jnp.zeros((H,), DTYPE),
            "Wv": _normal(next(keys), (H, H)), "bv": jnp.zeros((H,), DTYPE),
            "Wo": _normal(next(keys), (H, H)), "bo": jnp.zeros((H,), DTYPE),
            "ln1_g": jnp.ones((H,), DTYPE), "ln1_b": jnp.zeros((H,), DTYPE),
            "W1": _normal(next(keys), (H, FFN)), "b1": jnp.zeros((FFN,), DTYPE),
            "W2": _normal(next(keys), (FFN, H)), "b2": jnp.zeros((H,), DTYPE),
            "ln2_g": jnp.ones((H,), DTYPE), "ln2_b": jnp.zeros((H,), DTYPE),
        }
        p["layers"].append(layer)
    # MLM prediction head (BertLMPredictionHead): transform + tied decoder.
    p["mlm_Wt"] = _normal(next(keys), (H, H))
    p["mlm_bt"] = jnp.zeros((H,), DTYPE)
    p["mlm_ln_g"] = jnp.ones((H,), DTYPE)
    p["mlm_ln_b"] = jnp.zeros((H,), DTYPE)
    p["mlm_dec_b"] = jnp.zeros((V,), DTYPE)   # decoder weight tied to word_emb
    return p


def pack_params(p):
    """Stack per-layer weights to [NLAYERS, ...], fuse QKV, fold 1/sqrt(DH)
    into Wq/bq, and pre-cast all matmul weights to bf16.  Runs once."""
    scale = 1.0 / float(np.sqrt(DH))

    def stack(fn):
        return jnp.stack([fn(lp) for lp in p["layers"]], axis=0)

    def bf16(x):
        return x.astype(MXU_DTYPE)

    return {
        "word_emb": p["word_emb"],                        # f32 for embedding gather
        "word_emb_bf16": bf16(p["word_emb"]),             # pre-cast tied decoder
        "pos_emb": p["pos_emb"],
        "type_emb": p["type_emb"],
        "emb_ln_g": p["emb_ln_g"].reshape(1, H),
        "emb_ln_b": p["emb_ln_b"].reshape(1, H),
        "Wqkv": bf16(stack(lambda lp: jnp.concatenate(
            [lp["Wq"] * scale, lp["Wk"], lp["Wv"]], axis=1))),      # [L, H, 3H]
        "bqkv": stack(lambda lp: jnp.concatenate(
            [lp["bq"] * scale, lp["bk"], lp["bv"]]).reshape(1, 3 * H)),
        "Wo": bf16(stack(lambda lp: lp["Wo"])),
        "bo": stack(lambda lp: lp["bo"].reshape(1, H)),
        "ln1_g": stack(lambda lp: lp["ln1_g"].reshape(1, H)),
        "ln1_b": stack(lambda lp: lp["ln1_b"].reshape(1, H)),
        "W1": bf16(stack(lambda lp: lp["W1"])),
        "b1": stack(lambda lp: lp["b1"].reshape(1, FFN)),
        "W2": bf16(stack(lambda lp: lp["W2"])),
        "b2": stack(lambda lp: lp["b2"].reshape(1, H)),
        "ln2_g": stack(lambda lp: lp["ln2_g"].reshape(1, H)),
        "ln2_b": stack(lambda lp: lp["ln2_b"].reshape(1, H)),
        "mlm_Wt": bf16(p["mlm_Wt"]),
        "mlm_bt": p["mlm_bt"].reshape(1, H),
        "mlm_ln_g": p["mlm_ln_g"].reshape(1, H),
        "mlm_ln_b": p["mlm_ln_b"].reshape(1, H),
        "mlm_dec_b": p["mlm_dec_b"].reshape(1, V),
    }


# ------------------------------ forward pass ------------------------------
def transformer_pvp_forward(packed, input_ids, token_type_ids, attention_mask,
                            mask_idx):
    """Returns (x_mlm [B,S,V], x_encoder_mask [Nmask,H], x_mlm_mask [Nmask,V])."""
    Bb, Ss = input_ids.shape

    # Embedding gathers are plain-JAX glue (dynamic gather); everything else
    # runs inside the single fused Pallas kernel.
    emb = (packed["word_emb"][input_ids]
           + packed["pos_emb"][jnp.arange(Ss)][None, :, :]
           + packed["type_emb"][token_type_ids]).astype(DTYPE)
    emb_flat = emb.reshape(Bb * Ss, H)

    # Block-diagonal additive mask over flattened [B*S] rows: query i may
    # attend key j iff same batch AND key j is not padded.  Computed once per
    # call (hoisted out of the per-layer loop, out of the kernel entirely).
    batch_ids = jnp.repeat(jnp.arange(Bb), Ss)
    same_batch = batch_ids[:, None] == batch_ids[None, :]
    key_valid = attention_mask.reshape(Bb * Ss) > 0
    mask2d = jnp.where(same_batch & key_valid[None, :],
                       0.0, -1e9).astype(jnp.float32)            # [BS, BS]

    h_out, logits = fused_forward(packed, emb_flat, mask2d)

    x_mlm = logits.reshape(Bb, Ss, V)                 # [B, S, V]
    x_encoder_mask = h_out[mask_idx]                  # [Nmask, H]
    x_mlm_mask = logits[mask_idx]                     # [Nmask, V]
    return x_mlm, x_encoder_mask, x_mlm_mask


# ---------------------------------- main ----------------------------------
if __name__ == "__main__":
    root = jax.random.PRNGKey(0)
    k_params, k_ids, k_types = jax.random.split(root, 3)

    params = init_params(k_params)
    packed = pack_params(params)

    input_ids = jax.random.randint(k_ids, (B, S), 1, V, dtype=jnp.int32)
    token_type_ids = jnp.zeros((B, S), dtype=jnp.int32)
    attention_mask = np.ones((B, S), dtype=np.float32)
    attention_mask[1, 7] = 0.0  # one padded token
    attention_mask = jnp.asarray(attention_mask)

    # mlm_labels: >0 marks masked positions (as in the PyTorch forward).
    mlm_labels = np.zeros((B, S), dtype=np.int32)
    mlm_labels[0, 2] = 17
    mlm_labels[0, 5] = 42
    mlm_labels[1, 1] = 99
    mlm_labels[1, 6] = 7
    # TODO(synk): dynamic boolean indexing has no static-shape JAX equivalent;
    # the mask is concrete input data, so compute the row indices host-side.
    mask_idx = jnp.asarray(np.flatnonzero(mlm_labels > 0), dtype=jnp.int32)

    fwd = jax.jit(transformer_pvp_forward)
    x_mlm, x_enc_mask, x_mlm_mask = fwd(packed, input_ids, token_type_ids,
                                        attention_mask, mask_idx)
    jax.block_until_ready((x_mlm, x_enc_mask, x_mlm_mask))

    assert x_mlm.shape == (B, S, V)
    assert x_enc_mask.shape == (mask_idx.shape[0], H)
    assert x_mlm_mask.shape == (mask_idx.shape[0], V)
    assert np.all(np.isfinite(np.asarray(x_mlm)))
    assert np.all(np.isfinite(np.asarray(x_enc_mask)))
    assert np.all(np.isfinite(np.asarray(x_mlm_mask)))
    print("KERNEL_OK")
</pallas_src>

<mosaic_0001>
module attributes {stable_mosaic.version = 11 : i64} {
  func.func @_encoder_mlm_kernel(%arg0: memref<16x32xf32, #tpu.memory_space<vmem>>, %arg1: memref<16x16xf32, #tpu.memory_space<vmem>>, %arg2: memref<1x32xf32, #tpu.memory_space<vmem>>, %arg3: memref<1x32xf32, #tpu.memory_space<vmem>>, %arg4: memref<2x32x96xbf16, #tpu.memory_space<vmem>>, %arg5: memref<2x1x96xf32, #tpu.memory_space<vmem>>, %arg6: memref<2x32x32xbf16, #tpu.memory_space<vmem>>, %arg7: memref<2x1x32xf32, #tpu.memory_space<vmem>>, %arg8: memref<2x1x32xf32, #tpu.memory_space<vmem>>, %arg9: memref<2x1x32xf32, #tpu.memory_space<vmem>>, %arg10: memref<2x32x64xbf16, #tpu.memory_space<vmem>>, %arg11: memref<2x1x64xf32, #tpu.memory_space<vmem>>, %arg12: memref<2x64x32xbf16, #tpu.memory_space<vmem>>, %arg13: memref<2x1x32xf32, #tpu.memory_space<vmem>>, %arg14: memref<2x1x32xf32, #tpu.memory_space<vmem>>, %arg15: memref<2x1x32xf32, #tpu.memory_space<vmem>>, %arg16: memref<32x32xbf16, #tpu.memory_space<vmem>>, %arg17: memref<1x32xf32, #tpu.memory_space<vmem>>, %arg18: memref<1x32xf32, #tpu.memory_space<vmem>>, %arg19: memref<1x32xf32, #tpu.memory_space<vmem>>, %arg20: memref<256x32xbf16, #tpu.memory_space<vmem>>, %arg21: memref<1x256xf32, #tpu.memory_space<vmem>>, %arg22: memref<16x32xf32, #tpu.memory_space<vmem>>, %arg23: memref<16x256xf32, #tpu.memory_space<vmem>>) attributes {dimension_semantics = [], scalar_prefetch = 0 : i64, scratch_operands = 0 : i64, tpu.core_type = #tpu.core_type<tc>} {
    %c0 = arith.constant 0 : index
    %c0_0 = arith.constant 0 : index
    %0 = vector.load %arg0[%c0, %c0_0] : memref<16x32xf32, #tpu.memory_space<vmem>>, vector<16x32xf32>
    %c0_1 = arith.constant 0 : index
    %c0_2 = arith.constant 0 : index
    %1 = vector.load %arg2[%c0_1, %c0_2] : memref<1x32xf32, #tpu.memory_space<vmem>>, vector<1x32xf32>
    %c0_3 = arith.constant 0 : index
    %c0_4 = arith.constant 0 : index
    %2 = vector.load %arg3[%c0_3, %c0_4] : memref<1x32xf32, #tpu.memory_space<vmem>>, vector<1x32xf32>
    %cst = arith.constant dense<0.000000e+00> : vector<16xf32>
    %3 = vector.multi_reduction <add>, %0, %cst [1] : vector<16x32xf32> to vector<16xf32>
    %4 = vector.shape_cast %3 : vector<16xf32> to vector<16x1xf32>
    %cst_5 = arith.constant 3.200000e+01 : f32
    %5 = vector.broadcast %cst_5 : f32 to vector<16x1xf32>
    %6 = arith.divf %4, %5 : vector<16x1xf32>
    %7 = vector.broadcast %6 : vector<16x1xf32> to vector<16x32xf32>
    %8 = arith.subf %0, %7 : vector<16x32xf32>
    %9 = arith.mulf %8, %8 : vector<16x32xf32>
    %cst_6 = arith.constant dense<0.000000e+00> : vector<16xf32>
    %10 = vector.multi_reduction <add>, %9, %cst_6 [1] : vector<16x32xf32> to vector<16xf32>
    %11 = vector.shape_cast %10 : vector<16xf32> to vector<16x1xf32>
    %cst_7 = arith.constant 3.200000e+01 : f32
    %12 = vector.broadcast %cst_7 : f32 to vector<16x1xf32>
    %13 = arith.divf %11, %12 : vector<16x1xf32>
    %14 = vector.broadcast %6 : vector<16x1xf32> to vector<16x32xf32>
    %15 = arith.subf %0, %14 : vector<16x32xf32>
    %cst_8 = arith.constant 9.99999996E-13 : f32
    %16 = vector.broadcast %cst_8 : f32 to vector<16x1xf32>
    %17 = arith.addf %13, %16 : vector<16x1xf32>
    %18 = math.rsqrt %17 : vector<16x1xf32>
    %19 = vector.broadcast %18 : vector<16x1xf32> to vector<16x32xf32>
    %20 = arith.mulf %15, %19 : vector<16x32xf32>
    %21 = vector.broadcast %1 : vector<1x32xf32> to vector<16x32xf32>
    %22 = arith.mulf %20, %21 : vector<16x32xf32>
    %23 = vector.broadcast %2 : vector<1x32xf32> to vector<16x32xf32>
    %24 = arith.addf %22, %23 : vector<16x32xf32>
    %c0_9 = arith.constant 0 : index
    %c0_10 = arith.constant 0 : index
    %25 = vector.load %arg1[%c0_9, %c0_10] : memref<16x16xf32, #tpu.memory_space<vmem>>, vector<16x16xf32>
    %c0_11 = arith.constant 0 : index
    %c0_12 = arith.constant 0 : index
    %c0_13 = arith.constant 0 : index
    %26 = vector.load %arg4[%c0_11, %c0_12, %c0_13] : memref<2x32x96xbf16, #tpu.memory_space<vmem>>, vector<1x32x96xbf16>
    %27 = vector.shape_cast %26 : vector<1x32x96xbf16> to vector<32x96xbf16>
    %28 = arith.truncf %24 : vector<16x32xf32> to vector<16x32xbf16>
    %cst_14 = arith.constant dense<0.000000e+00> : vector<16x96xf32>
    %29 = tpu.matmul %28, %27, %cst_14 {dimension_numbers = #tpu.dot_dimension_numbers<[1], [0], [0], [1], [0, 0, 1, 1], [], []>} : vector<16x32xbf16>, vector<32x96xbf16>, vector<16x96xf32> -> vector<16x96xf32>
    %c0_15 = arith.constant 0 : index
    %c0_16 = arith.constant 0 : index
    %c0_17 = arith.constant 0 : index
    %30 = vector.load %arg5[%c0_15, %c0_16, %c0_17] : memref<2x1x96xf32, #tpu.memory_space<vmem>>, vector<1x1x96xf32>
    %31 = vector.shape_cast %30 : vector<1x1x96xf32> to vector<1x96xf32>
    %32 = vector.broadcast %31 : vector<1x96xf32> to vector<16x96xf32>
    %33 = arith.addf %29, %32 : vector<16x96xf32>
    %c0_18 = arith.constant 0 : index
    %c0_19 = arith.constant 0 : index
    %c0_20 = arith.constant 0 : index
    %34 = vector.load %arg6[%c0_18, %c0_19, %c0_20] : memref<2x32x32xbf16, #tpu.memory_space<vmem>>, vector<1x32x32xbf16>
    %35 = vector.shape_cast %34 : vector<1x32x32xbf16> to vector<32x32xbf16>
    %cst_21 = arith.constant 0.000000e+00 : f32
    %36 = vector.broadcast %cst_21 : f32 to vector<16x32xf32>
    %37 = vector.extract_strided_slice %33 {offsets = [0, 0], sizes = [16, 16], strides = [1, 1]} : vector<16x96xf32> to vector<16x16xf32>
    %38 = vector.extract_strided_slice %33 {offsets = [0, 32], sizes = [16, 16], strides = [1, 1]} : vector<16x96xf32> to vector<16x16xf32>
    %39 = vector.extract_strided_slice %33 {offsets = [0, 64], sizes = [16, 16], strides = [1, 1]} : vector<16x96xf32> to vector<16x16xf32>
    %40 = arith.truncf %37 : vector<16x16xf32> to vector<16x16xbf16>
    %41 = arith.truncf %38 : vector<16x16xf32> to vector<16x16xbf16>
    %cst_22 = arith.constant dense<0.000000e+00> : vector<16x16xf32>
    %42 = tpu.matmul %40, %41, %cst_22 {dimension_numbers = #tpu.dot_dimension_numbers<[1], [1], [0], [0], [0, 0, 1, 0], [], []>} : vector<16x16xbf16>, vector<16x16xbf16>, vector<16x16xf32> -> vector<16x16xf32>
    %43 = arith.addf %42, %25 : vector<16x16xf32>
    %cst_23 = arith.constant dense<0xFF800000> : vector<16xf32>
    %44 = vector.multi_reduction <maximumf>, %43, %cst_23 [1] : vector<16x16xf32> to vector<16xf32>
    %45 = vector.shape_cast %44 : vector<16xf32> to vector<16x1xf32>
    %46 = vector.broadcast %45 : vector<16x1xf32> to vector<16x16xf32>
    %47 = arith.subf %43, %46 : vector<16x16xf32>
    %48 = math.exp %47 : vector<16x16xf32>
    %cst_24 = arith.constant dense<0.000000e+00> : vector<16xf32>
    %49 = vector.multi_reduction <add>, %48, %cst_24 [1] : vector<16x16xf32> to vector<16xf32>
    %50 = vector.shape_cast %49 : vector<16xf32> to vector<16x1xf32>
    %51 = tpu.reciprocal %50 {approx = true} : vector<16x1xf32> -> vector<16x1xf32>
    %52 = vector.broadcast %51 : vector<16x1xf32> to vector<16x16xf32>
    %53 = arith.mulf %48, %52 : vector<16x16xf32>
    %54 = arith.truncf %53 : vector<16x16xf32> to vector<16x16xbf16>
    %55 = arith.truncf %39 : vector<16x16xf32> to vector<16x16xbf16>
    %cst_25 = arith.constant dense<0.000000e+00> : vector<16x16xf32>
    %56 = tpu.matmul %54, %55, %cst_25 {dimension_numbers = #tpu.dot_dimension_numbers<[1], [0], [0], [1], [0, 0, 1, 1], [], []>} : vector<16x16xbf16>, vector<16x16xbf16>, vector<16x16xf32> -> vector<16x16xf32>
    %57 = vector.extract_strided_slice %35 {offsets = [0, 0], sizes = [16, 32], strides = [1, 1]} : vector<32x32xbf16> to vector<16x32xbf16>
    %58 = arith.truncf %56 : vector<16x16xf32> to vector<16x16xbf16>
    %cst_26 = arith.constant dense<0.000000e+00> : vector<16x32xf32>
    %59 = tpu.matmul %58, %57, %cst_26 {dimension_numbers = #tpu.dot_dimension_numbers<[1], [0], [0], [1], [0, 0, 1, 1], [], []>} : vector<16x16xbf16>, vector<16x32xbf16>, vector<16x32xf32> -> vector<16x32xf32>
    %60 = arith.addf %36, %59 : vector<16x32xf32>
    %61 = vector.extract_strided_slice %33 {offsets = [0, 16], sizes = [16, 16], strides = [1, 1]} : vector<16x96xf32> to vector<16x16xf32>
    %62 = vector.extract_strided_slice %33 {offsets = [0, 48], sizes = [16, 16], strides = [1, 1]} : vector<16x96xf32> to vector<16x16xf32>
    %63 = vector.extract_strided_slice %33 {offsets = [0, 80], sizes = [16, 16], strides = [1, 1]} : vector<16x96xf32> to vector<16x16xf32>
    %64 = arith.truncf %61 : vector<16x16xf32> to vector<16x16xbf16>
    %65 = arith.truncf %62 : vector<16x16xf32> to vector<16x16xbf16>
    %cst_27 = arith.constant dense<0.000000e+00> : vector<16x16xf32>
    %66 = tpu.matmul %64, %65, %cst_27 {dimension_numbers = #tpu.dot_dimension_numbers<[1], [1], [0], [0], [0, 0, 1, 0], [], []>} : vector<16x16xbf16>, vector<16x16xbf16>, vector<16x16xf32> -> vector<16x16xf32>
    %67 = arith.addf %66, %25 : vector<16x16xf32>
    %cst_28 = arith.constant dense<0xFF800000> : vector<16xf32>
    %68 = vector.multi_reduction <maximumf>, %67, %cst_28 [1] : vector<16x16xf32> to vector<16xf32>
    %69 = vector.shape_cast %68 : vector<16xf32> to vector<16x1xf32>
    %70 = vector.broadcast %69 : vector<16x1xf32> to vector<16x16xf32>
    %71 = arith.subf %67, %70 : vector<16x16xf32>
    %72 = math.exp %71 : vector<16x16xf32>
    %cst_29 = arith.constant dense<0.000000e+00> : vector<16xf32>
    %73 = vector.multi_reduction <add>, %72, %cst_29 [1] : vector<16x16xf32> to vector<16xf32>
    %74 = vector.shape_cast %73 : vector<16xf32> to vector<16x1xf32>
    %75 = tpu.reciprocal %74 {approx = true} : vector<16x1xf32> -> vector<16x1xf32>
    %76 = vector.broadcast %75 : vector<16x1xf32> to vector<16x16xf32>
    %77 = arith.mulf %72, %76 : vector<16x16xf32>
    %78 = arith.truncf %77 : vector<16x16xf32> to vector<16x16xbf16>
    %79 = arith.truncf %63 : vector<16x16xf32> to vector<16x16xbf16>
    %cst_30 = arith.constant dense<0.000000e+00> : vector<16x16xf32>
    %80 = tpu.matmul %78, %79, %cst_30 {dimension_numbers = #tpu.dot_dimension_numbers<[1], [0], [0], [1], [0, 0, 1, 1], [], []>} : vector<16x16xbf16>, vector<16x16xbf16>, vector<16x16xf32> -> vector<16x16xf32>
    %81 = vector.extract_strided_slice %35 {offsets = [16, 0], sizes = [16, 32], strides = [1, 1]} : vector<32x32xbf16> to vector<16x32xbf16>
    %82 = arith.truncf %80 : vector<16x16xf32> to vector<16x16xbf16>
    %cst_31 = arith.constant dense<0.000000e+00> : vector<16x32xf32>
    %83 = tpu.matmul %82, %81, %cst_31 {dimension_numbers = #tpu.dot_dimension_numbers<[1], [0], [0], [1], [0, 0, 1, 1], [], []>} : vector<16x16xbf16>, vector<16x32xbf16>, vector<16x32xf32> -> vector<16x32xf32>
    %84 = arith.addf %60, %83 : vector<16x32xf32>
    %c0_32 = arith.constant 0 : index
    %c0_33 = arith.constant 0 : index
    %c0_34 = arith.constant 0 : index
    %85 = vector.load %arg7[%c0_32, %c0_33, %c0_34] : memref<2x1x32xf32, #tpu.memory_space<vmem>>, vector<1x1x32xf32>
    %86 = vector.shape_cast %85 : vector<1x1x32xf32> to vector<1x32xf32>
    %87 = vector.broadcast %86 : vector<1x32xf32> to vector<16x32xf32>
    %88 = arith.addf %84, %87 : vector<16x32xf32>
    %89 = arith.addf %88, %24 : vector<16x32xf32>
    %c0_35 = arith.constant 0 : index
    %c0_36 = arith.constant 0 : index
    %c0_37 = arith.constant 0 : index
    %90 = vector.load %arg8[%c0_35, %c0_36, %c0_37] : memref<2x1x32xf32, #tpu.memory_space<vmem>>, vector<1x1x32xf32>
    %91 = vector.shape_cast %90 : vector<1x1x32xf32> to vector<1x32xf32>
    %c0_38 = arith.constant 0 : index
    %c0_39 = arith.constant 0 : index
    %c0_40 = arith.constant 0 : index
    %92 = vector.load %arg9[%c0_38, %c0_39, %c0_40] : memref<2x1x32xf32, #tpu.memory_space<vmem>>, vector<1x1x32xf32>
    %93 = vector.shape_cast %92 : vector<1x1x32xf32> to vector<1x32xf32>
    %cst_41 = arith.constant dense<0.000000e+00> : vector<16xf32>
    %94 = vector.multi_reduction <add>, %89, %cst_41 [1] : vector<16x32xf32> to vector<16xf32>
    %95 = vector.shape_cast %94 : vector<16xf32> to vector<16x1xf32>
    %cst_42 = arith.constant 3.200000e+01 : f32
    %96 = vector.broadcast %cst_42 : f32 to vector<16x1xf32>
    %97 = arith.divf %95, %96 : vector<16x1xf32>
    %98 = vector.broadcast %97 : vector<16x1xf32> to vector<16x32xf32>
    %99 = arith.subf %89, %98 : vector<16x32xf32>
    %100 = arith.mulf %99, %99 : vector<16x32xf32>
    %cst_43 = arith.constant dense<0.000000e+00> : vector<16xf32>
    %101 = vector.multi_reduction <add>, %100, %cst_43 [1] : vector<16x32xf32> to vector<16xf32>
    %102 = vector.shape_cast %101 : vector<16xf32> to vector<16x1xf32>
    %cst_44 = arith.constant 3.200000e+01 : f32
    %103 = vector.broadcast %cst_44 : f32 to vector<16x1xf32>
    %104 = arith.divf %102, %103 : vector<16x1xf32>
    %105 = vector.broadcast %97 : vector<16x1xf32> to vector<16x32xf32>
    %106 = arith.subf %89, %105 : vector<16x32xf32>
    %cst_45 = arith.constant 9.99999996E-13 : f32
    %107 = vector.broadcast %cst_45 : f32 to vector<16x1xf32>
    %108 = arith.addf %104, %107 : vector<16x1xf32>
    %109 = math.rsqrt %108 : vector<16x1xf32>
    %110 = vector.broadcast %109 : vector<16x1xf32> to vector<16x32xf32>
    %111 = arith.mulf %106, %110 : vector<16x32xf32>
    %112 = vector.broadcast %91 : vector<1x32xf32> to vector<16x32xf32>
    %113 = arith.mulf %111, %112 : vector<16x32xf32>
    %114 = vector.broadcast %93 : vector<1x32xf32> to vector<16x32xf32>
    %115 = arith.addf %113, %114 : vector<16x32xf32>
    %c0_46 = arith.constant 0 : index
    %c0_47 = arith.constant 0 : index
    %c0_48 = arith.constant 0 : index
    %116 = vector.load %arg10[%c0_46, %c0_47, %c0_48] : memref<2x32x64xbf16, #tpu.memory_space<vmem>>, vector<1x32x64xbf16>
    %117 = vector.shape_cast %116 : vector<1x32x64xbf16> to vector<32x64xbf16>
    %118 = arith.truncf %115 : vector<16x32xf32> to vector<16x32xbf16>
    %cst_49 = arith.constant dense<0.000000e+00> : vector<16x64xf32>
    %119 = tpu.matmul %118, %117, %cst_49 {dimension_numbers = #tpu.dot_dimension_numbers<[1], [0], [0], [1], [0, 0, 1, 1], [], []>} : vector<16x32xbf16>, vector<32x64xbf16>, vector<16x64xf32> -> vector<16x64xf32>
    %c0_50 = arith.constant 0 : index
    %c0_51 = arith.constant 0 : index
    %c0_52 = arith.constant 0 : index
    %120 = vector.load %arg11[%c0_50, %c0_51, %c0_52] : memref<2x1x64xf32, #tpu.memory_space<vmem>>, vector<1x1x64xf32>
    %121 = vector.shape_cast %120 : vector<1x1x64xf32> to vector<1x64xf32>
    %122 = vector.broadcast %121 : vector<1x64xf32> to vector<16x64xf32>
    %123 = arith.addf %119, %122 : vector<16x64xf32>
    %cst_53 = arith.constant 5.000000e-01 : f32
    %124 = vector.broadcast %cst_53 : f32 to vector<16x64xf32>
    %125 = arith.mulf %124, %123 : vector<16x64xf32>
    %cst_54 = arith.constant 4.471500e-02 : f32
    %126 = vector.broadcast %cst_54 : f32 to vector<16x64xf32>
    %127 = arith.mulf %126, %123 : vector<16x64xf32>
    %128 = arith.mulf %127, %123 : vector<16x64xf32>
    %129 = arith.mulf %128, %123 : vector<16x64xf32>
    %130 = arith.addf %123, %129 : vector<16x64xf32>
    %cst_55 = arith.constant 0.797884583 : f32
    %131 = vector.broadcast %cst_55 : f32 to vector<16x64xf32>
    %132 = arith.mulf %131, %130 : vector<16x64xf32>
    %133 = math.tanh %132 : vector<16x64xf32>
    %cst_56 = arith.constant 1.000000e+00 : f32
    %134 = vector.broadcast %cst_56 : f32 to vector<16x64xf32>
    %135 = arith.addf %134, %133 : vector<16x64xf32>
    %136 = arith.mulf %125, %135 : vector<16x64xf32>
    %c0_57 = arith.constant 0 : index
    %c0_58 = arith.constant 0 : index
    %c0_59 = arith.constant 0 : index
    %137 = vector.load %arg12[%c0_57, %c0_58, %c0_59] : memref<2x64x32xbf16, #tpu.memory_space<vmem>>, vector<1x64x32xbf16>
    %138 = vector.shape_cast %137 : vector<1x64x32xbf16> to vector<64x32xbf16>
    %139 = arith.truncf %136 : vector<16x64xf32> to vector<16x64xbf16>
    %cst_60 = arith.constant dense<0.000000e+00> : vector<16x32xf32>
    %140 = tpu.matmul %139, %138, %cst_60 {dimension_numbers = #tpu.dot_dimension_numbers<[1], [0], [0], [1], [0, 0, 1, 1], [], []>} : vector<16x64xbf16>, vector<64x32xbf16>, vector<16x32xf32> -> vector<16x32xf32>
    %c0_61 = arith.constant 0 : index
    %c0_62 = arith.constant 0 : index
    %c0_63 = arith.constant 0 : index
    %141 = vector.load %arg13[%c0_61, %c0_62, %c0_63] : memref<2x1x32xf32, #tpu.memory_space<vmem>>, vector<1x1x32xf32>
    %142 = vector.shape_cast %141 : vector<1x1x32xf32> to vector<1x32xf32>
    %143 = vector.broadcast %142 : vector<1x32xf32> to vector<16x32xf32>
    %144 = arith.addf %140, %143 : vector<16x32xf32>
    %145 = arith.addf %144, %115 : vector<16x32xf32>
    %c0_64 = arith.constant 0 : index
    %c0_65 = arith.constant 0 : index
    %c0_66 = arith.constant 0 : index
    %146 = vector.load %arg14[%c0_64, %c0_65, %c0_66] : memref<2x1x32xf32, #tpu.memory_space<vmem>>, vector<1x1x32xf32>
    %147 = vector.shape_cast %146 : vector<1x1x32xf32> to vector<1x32xf32>
    %c0_67 = arith.constant 0 : index
    %c0_68 = arith.constant 0 : index
    %c0_69 = arith.constant 0 : index
    %148 = vector.load %arg15[%c0_67, %c0_68, %c0_69] : memref<2x1x32xf32, #tpu.memory_space<vmem>>, vector<1x1x32xf32>
    %149 = vector.shape_cast %148 : vector<1x1x32xf32> to vector<1x32xf32>
    %cst_70 = arith.constant dense<0.000000e+00> : vector<16xf32>
    %150 = vector.multi_reduction <add>, %145, %cst_70 [1] : vector<16x32xf32> to vector<16xf32>
    %151 = vector.shape_cast %150 : vector<16xf32> to vector<16x1xf32>
    %cst_71 = arith.constant 3.200000e+01 : f32
    %152 = vector.broadcast %cst_71 : f32 to vector<16x1xf32>
    %153 = arith.divf %151, %152 : vector<16x1xf32>
    %154 = vector.broadcast %153 : vector<16x1xf32> to vector<16x32xf32>
    %155 = arith.subf %145, %154 : vector<16x32xf32>
    %156 = arith.mulf %155, %155 : vector<16x32xf32>
    %cst_72 = arith.constant dense<0.000000e+00> : vector<16xf32>
    %157 = vector.multi_reduction <add>, %156, %cst_72 [1] : vector<16x32xf32> to vector<16xf32>
    %158 = vector.shape_cast %157 : vector<16xf32> to vector<16x1xf32>
    %cst_73 = arith.constant 3.200000e+01 : f32
    %159 = vector.broadcast %cst_73 : f32 to vector<16x1xf32>
    %160 = arith.divf %158, %159 : vector<16x1xf32>
    %161 = vector.broadcast %153 : vector<16x1xf32> to vector<16x32xf32>
    %162 = arith.subf %145, %161 : vector<16x32xf32>
    %cst_74 = arith.constant 9.99999996E-13 : f32
    %163 = vector.broadcast %cst_74 : f32 to vector<16x1xf32>
    %164 = arith.addf %160, %163 : vector<16x1xf32>
    %165 = math.rsqrt %164 : vector<16x1xf32>
    %166 = vector.broadcast %165 : vector<16x1xf32> to vector<16x32xf32>
    %167 = arith.mulf %162, %166 : vector<16x32xf32>
    %168 = vector.broadcast %147 : vector<1x32xf32> to vector<16x32xf32>
    %169 = arith.mulf %167, %168 : vector<16x32xf32>
    %170 = vector.broadcast %149 : vector<1x32xf32> to vector<16x32xf32>
    %171 = arith.addf %169, %170 : vector<16x32xf32>
    %c1 = arith.constant 1 : index
    %c0_75 = arith.constant 0 : index
    %c0_76 = arith.constant 0 : index
    %172 = vector.load %arg4[%c1, %c0_75, %c0_76] : memref<2x32x96xbf16, #tpu.memory_space<vmem>>, vector<1x32x96xbf16>
    %173 = vector.shape_cast %172 : vector<1x32x96xbf16> to vector<32x96xbf16>
    %174 = arith.truncf %171 : vector<16x32xf32> to vector<16x32xbf16>
    %cst_77 = arith.constant dense<0.000000e+00> : vector<16x96xf32>
    %175 = tpu.matmul %174, %173, %cst_77 {dimension_numbers = #tpu.dot_dimension_numbers<[1], [0], [0], [1], [0, 0, 1, 1], [], []>} : vector<16x32xbf16>, vector<32x96xbf16>, vector<16x96xf32> -> vector<16x96xf32>
    %c1_78 = arith.constant 1 : index
    %c0_79 = arith.constant 0 : index
    %c0_80 = arith.constant 0 : index
    %176 = vector.load %arg5[%c1_78, %c0_79, %c0_80] : memref<2x1x96xf32, #tpu.memory_space<vmem>>, vector<1x1x96xf32>
    %177 = vector.shape_cast %176 : vector<1x1x96xf32> to vector<1x96xf32>
    %178 = vector.broadcast %177 : vector<1x96xf32> to vector<16x96xf32>
    %179 = arith.addf %175, %178 : vector<16x96xf32>
    %c1_81 = arith.constant 1 : index
    %c0_82 = arith.constant 0 : index
    %c0_83 = arith.constant 0 : index
    %180 = vector.load %arg6[%c1_81, %c0_82, %c0_83] : memref<2x32x32xbf16, #tpu.memory_space<vmem>>, vector<1x32x32xbf16>
    %181 = vector.shape_cast %180 : vector<1x32x32xbf16> to vector<32x32xbf16>
    %cst_84 = arith.constant 0.000000e+00 : f32
    %182 = vector.broadcast %cst_84 : f32 to vector<16x32xf32>
    %183 = vector.extract_strided_slice %179 {offsets = [0, 0], sizes = [16, 16], strides = [1, 1]} : vector<16x96xf32> to vector<16x16xf32>
    %184 = vector.extract_strided_slice %179 {offsets = [0, 32], sizes = [16, 16], strides = [1, 1]} : vector<16x96xf32> to vector<16x16xf32>
    %185 = vector.extract_strided_slice %179 {offsets = [0, 64], sizes = [16, 16], strides = [1, 1]} : vector<16x96xf32> to vector<16x16xf32>
    %186 = arith.truncf %183 : vector<16x16xf32> to vector<16x16xbf16>
    %187 = arith.truncf %184 : vector<16x16xf32> to vector<16x16xbf16>
    %cst_85 = arith.constant dense<0.000000e+00> : vector<16x16xf32>
    %188 = tpu.matmul %186, %187, %cst_85 {dimension_numbers = #tpu.dot_dimension_numbers<[1], [1], [0], [0], [0, 0, 1, 0], [], []>} : vector<16x16xbf16>, vector<16x16xbf16>, vector<16x16xf32> -> vector<16x16xf32>
    %189 = arith.addf %188, %25 : vector<16x16xf32>
    %cst_86 = arith.constant dense<0xFF800000> : vector<16xf32>
    %190 = vector.multi_reduction <maximumf>, %189, %cst_86 [1] : vector<16x16xf32> to vector<16xf32>
    %191 = vector.shape_cast %190 : vector<16xf32> to vector<16x1xf32>
    %192 = vector.broadcast %191 : vector<16x1xf32> to vector<16x16xf32>
    %193 = arith.subf %189, %192 : vector<16x16xf32>
    %194 = math.exp %193 : vector<16x16xf32>
    %cst_87 = arith.constant dense<0.000000e+00> : vector<16xf32>
    %195 = vector.multi_reduction <add>, %194, %cst_87 [1] : vector<16x16xf32> to vector<16xf32>
    %196 = vector.shape_cast %195 : vector<16xf32> to vector<16x1xf32>
    %197 = tpu.reciprocal %196 {approx = true} : vector<16x1xf32> -> vector<16x1xf32>
    %198 = vector.broadcast %197 : vector<16x1xf32> to vector<16x16xf32>
    %199 = arith.mulf %194, %198 : vector<16x16xf32>
    %200 = arith.truncf %199 : vector<16x16xf32> to vector<16x16xbf16>
    %201 = arith.truncf %185 : vector<16x16xf32> to vector<16x16xbf16>
    %cst_88 = arith.constant dense<0.000000e+00> : vector<16x16xf32>
    %202 = tpu.matmul %200, %201, %cst_88 {dimension_numbers = #tpu.dot_dimension_numbers<[1], [0], [0], [1], [0, 0, 1, 1], [], []>} : vector<16x16xbf16>, vector<16x16xbf16>, vector<16x16xf32> -> vector<16x16xf32>
    %203 = vector.extract_strided_slice %181 {offsets = [0, 0], sizes = [16, 32], strides = [1, 1]} : vector<32x32xbf16> to vector<16x32xbf16>
    %204 = arith.truncf %202 : vector<16x16xf32> to vector<16x16xbf16>
    %cst_89 = arith.constant dense<0.000000e+00> : vector<16x32xf32>
    %205 = tpu.matmul %204, %203, %cst_89 {dimension_numbers = #tpu.dot_dimension_numbers<[1], [0], [0], [1], [0, 0, 1, 1], [], []>} : vector<16x16xbf16>, vector<16x32xbf16>, vector<16x32xf32> -> vector<16x32xf32>
    %206 = arith.addf %182, %205 : vector<16x32xf32>
    %207 = vector.extract_strided_slice %179 {offsets = [0, 16], sizes = [16, 16], strides = [1, 1]} : vector<16x96xf32> to vector<16x16xf32>
    %208 = vector.extract_strided_slice %179 {offsets = [0, 48], sizes = [16, 16], strides = [1, 1]} : vector<16x96xf32> to vector<16x16xf32>
    %209 = vector.extract_strided_slice %179 {offsets = [0, 80], sizes = [16, 16], strides = [1, 1]} : vector<16x96xf32> to vector<16x16xf32>
    %210 = arith.truncf %207 : vector<16x16xf32> to vector<16x16xbf16>
    %211 = arith.truncf %208 : vector<16x16xf32> to vector<16x16xbf16>
    %cst_90 = arith.constant dense<0.000000e+00> : vector<16x16xf32>
    %212 = tpu.matmul %210, %211, %cst_90 {dimension_numbers = #tpu.dot_dimension_numbers<[1], [1], [0], [0], [0, 0, 1, 0], [], []>} : vector<16x16xbf16>, vector<16x16xbf16>, vector<16x16xf32> -> vector<16x16xf32>
    %213 = arith.addf %212, %25 : vector<16x16xf32>
    %cst_91 = arith.constant dense<0xFF800000> : vector<16xf32>
    %214 = vector.multi_reduction <maximumf>, %213, %cst_91 [1] : vector<16x16xf32> to vector<16xf32>
    %215 = vector.shape_cast %214 : vector<16xf32> to vector<16x1xf32>
    %216 = vector.broadcast %215 : vector<16x1xf32> to vector<16x16xf32>
    %217 = arith.subf %213, %216 : vector<16x16xf32>
    %218 = math.exp %217 : vector<16x16xf32>
    %cst_92 = arith.constant dense<0.000000e+00> : vector<16xf32>
    %219 = vector.multi_reduction <add>, %218, %cst_92 [1] : vector<16x16xf32> to vector<16xf32>
    %220 = vector.shape_cast %219 : vector<16xf32> to vector<16x1xf32>
    %221 = tpu.reciprocal %220 {approx = true} : vector<16x1xf32> -> vector<16x1xf32>
    %222 = vector.broadcast %221 : vector<16x1xf32> to vector<16x16xf32>
    %223 = arith.mulf %218, %222 : vector<16x16xf32>
    %224 = arith.truncf %223 : vector<16x16xf32> to vector<16x16xbf16>
    %225 = arith.truncf %209 : vector<16x16xf32> to vector<16x16xbf16>
    %cst_93 = arith.constant dense<0.000000e+00> : vector<16x16xf32>
    %226 = tpu.matmul %224, %225, %cst_93 {dimension_numbers = #tpu.dot_dimension_numbers<[1], [0], [0], [1], [0, 0, 1, 1], [], []>} : vector<16x16xbf16>, vector<16x16xbf16>, vector<16x16xf32> -> vector<16x16xf32>
    %227 = vector.extract_strided_slice %181 {offsets = [16, 0], sizes = [16, 32], strides = [1, 1]} : vector<32x32xbf16> to vector<16x32xbf16>
    %228 = arith.truncf %226 : vector<16x16xf32> to vector<16x16xbf16>
    %cst_94 = arith.constant dense<0.000000e+00> : vector<16x32xf32>
    %229 = tpu.matmul %228, %227, %cst_94 {dimension_numbers = #tpu.dot_dimension_numbers<[1], [0], [0], [1], [0, 0, 1, 1], [], []>} : vector<16x16xbf16>, vector<16x32xbf16>, vector<16x32xf32> -> vector<16x32xf32>
    %230 = arith.addf %206, %229 : vector<16x32xf32>
    %c1_95 = arith.constant 1 : index
    %c0_96 = arith.constant 0 : index
    %c0_97 = arith.constant 0 : index
    %231 = vector.load %arg7[%c1_95, %c0_96, %c0_97] : memref<2x1x32xf32, #tpu.memory_space<vmem>>, vector<1x1x32xf32>
    %232 = vector.shape_cast %231 : vector<1x1x32xf32> to vector<1x32xf32>
    %233 = vector.broadcast %232 : vector<1x32xf32> to vector<16x32xf32>
    %234 = arith.addf %230, %233 : vector<16x32xf32>
    %235 = arith.addf %234, %171 : vector<16x32xf32>
    %c1_98 = arith.constant 1 : index
    %c0_99 = arith.constant 0 : index
    %c0_100 = arith.constant 0 : index
    %236 = vector.load %arg8[%c1_98, %c0_99, %c0_100] : memref<2x1x32xf32, #tpu.memory_space<vmem>>, vector<1x1x32xf32>
    %237 = vector.shape_cast %236 : vector<1x1x32xf32> to vector<1x32xf32>
    %c1_101 = arith.constant 1 : index
    %c0_102 = arith.constant 0 : index
    %c0_103 = arith.constant 0 : index
    %238 = vector.load %arg9[%c1_101, %c0_102, %c0_103] : memref<2x1x32xf32, #tpu.memory_space<vmem>>, vector<1x1x32xf32>
    %239 = vector.shape_cast %238 : vector<1x1x32xf32> to vector<1x32xf32>
    %cst_104 = arith.constant dense<0.000000e+00> : vector<16xf32>
    %240 = vector.multi_reduction <add>, %235, %cst_104 [1] : vector<16x32xf32> to vector<16xf32>
    %241 = vector.shape_cast %240 : vector<16xf32> to vector<16x1xf32>
    %cst_105 = arith.constant 3.200000e+01 : f32
    %242 = vector.broadcast %cst_105 : f32 to vector<16x1xf32>
    %243 = arith.divf %241, %242 : vector<16x1xf32>
    %244 = vector.broadcast %243 : vector<16x1xf32> to vector<16x32xf32>
    %245 = arith.subf %235, %244 : vector<16x32xf32>
    %246 = arith.mulf %245, %245 : vector<16x32xf32>
    %cst_106 = arith.constant dense<0.000000e+00> : vector<16xf32>
    %247 = vector.multi_reduction <add>, %246, %cst_106 [1] : vector<16x32xf32> to vector<16xf32>
    %248 = vector.shape_cast %247 : vector<16xf32> to vector<16x1xf32>
    %cst_107 = arith.constant 3.200000e+01 : f32
    %249 = vector.broadcast %cst_107 : f32 to vector<16x1xf32>
    %250 = arith.divf %248, %249 : vector<16x1xf32>
    %251 = vector.broadcast %243 : vector<16x1xf32> to vector<16x32xf32>
    %252 = arith.subf %235, %251 : vector<16x32xf32>
    %cst_108 = arith.constant 9.99999996E-13 : f32
    %253 = vector.broadcast %cst_108 : f32 to vector<16x1xf32>
    %254 = arith.addf %250, %253 : vector<16x1xf32>
    %255 = math.rsqrt %254 : vector<16x1xf32>
    %256 = vector.broadcast %255 : vector<16x1xf32> to vector<16x32xf32>
    %257 = arith.mulf %252, %256 : vector<16x32xf32>
    %258 = vector.broadcast %237 : vector<1x32xf32> to vector<16x32xf32>
    %259 = arith.mulf %257, %258 : vector<16x32xf32>
    %260 = vector.broadcast %239 : vector<1x32xf32> to vector<16x32xf32>
    %261 = arith.addf %259, %260 : vector<16x32xf32>
    %c1_109 = arith.constant 1 : index
    %c0_110 = arith.constant 0 : index
    %c0_111 = arith.constant 0 : index
    %262 = vector.load %arg10[%c1_109, %c0_110, %c0_111] : memref<2x32x64xbf16, #tpu.memory_space<vmem>>, vector<1x32x64xbf16>
    %263 = vector.shape_cast %262 : vector<1x32x64xbf16> to vector<32x64xbf16>
    %264 = arith.truncf %261 : vector<16x32xf32> to vector<16x32xbf16>
    %cst_112 = arith.constant dense<0.000000e+00> : vector<16x64xf32>
    %265 = tpu.matmul %264, %263, %cst_112 {dimension_numbers = #tpu.dot_dimension_numbers<[1], [0], [0], [1], [0, 0, 1, 1], [], []>} : vector<16x32xbf16>, vector<32x64xbf16>, vector<16x64xf32> -> vector<16x64xf32>
    %c1_113 = arith.constant 1 : index
    %c0_114 = arith.constant 0 : index
    %c0_115 = arith.constant 0 : index
    %266 = vector.load %arg11[%c1_113, %c0_114, %c0_115] : memref<2x1x64xf32, #tpu.memory_space<vmem>>, vector<1x1x64xf32>
    %267 = vector.shape_cast %266 : vector<1x1x64xf32> to vector<1x64xf32>
    %268 = vector.broadcast %267 : vector<1x64xf32> to vector<16x64xf32>
    %269 = arith.addf %265, %268 : vector<16x64xf32>
    %cst_116 = arith.constant 5.000000e-01 : f32
    %270 = vector.broadcast %cst_116 : f32 to vector<16x64xf32>
    %271 = arith.mulf %270, %269 : vector<16x64xf32>
    %cst_117 = arith.constant 4.471500e-02 : f32
    %272 = vector.broadcast %cst_117 : f32 to vector<16x64xf32>
    %273 = arith.mulf %272, %269 : vector<16x64xf32>
    %274 = arith.mulf %273, %269 : vector<16x64xf32>
    %275 = arith.mulf %274, %269 : vector<16x64xf32>
    %276 = arith.addf %269, %275 : vector<16x64xf32>
    %cst_118 = arith.constant 0.797884583 : f32
    %277 = vector.broadcast %cst_118 : f32 to vector<16x64xf32>
    %278 = arith.mulf %277, %276 : vector<16x64xf32>
    %279 = math.tanh %278 : vector<16x64xf32>
    %cst_119 = arith.constant 1.000000e+00 : f32
    %280 = vector.broadcast %cst_119 : f32 to vector<16x64xf32>
    %281 = arith.addf %280, %279 : vector<16x64xf32>
    %282 = arith.mulf %271, %281 : vector<16x64xf32>
    %c1_120 = arith.constant 1 : index
    %c0_121 = arith.constant 0 : index
    %c0_122 = arith.constant 0 : index
    %283 = vector.load %arg12[%c1_120, %c0_121, %c0_122] : memref<2x64x32xbf16, #tpu.memory_space<vmem>>, vector<1x64x32xbf16>
    %284 = vector.shape_cast %283 : vector<1x64x32xbf16> to vector<64x32xbf16>
    %285 = arith.truncf %282 : vector<16x64xf32> to vector<16x64xbf16>
    %cst_123 = arith.constant dense<0.000000e+00> : vector<16x32xf32>
    %286 = tpu.matmul %285, %284, %cst_123 {dimension_numbers = #tpu.dot_dimension_numbers<[1], [0], [0], [1], [0, 0, 1, 1], [], []>} : vector<16x64xbf16>, vector<64x32xbf16>, vector<16x32xf32> -> vector<16x32xf32>
    %c1_124 = arith.constant 1 : index
    %c0_125 = arith.constant 0 : index
    %c0_126 = arith.constant 0 : index
    %287 = vector.load %arg13[%c1_124, %c0_125, %c0_126] : memref<2x1x32xf32, #tpu.memory_space<vmem>>, vector<1x1x32xf32>
    %288 = vector.shape_cast %287 : vector<1x1x32xf32> to vector<1x32xf32>
    %289 = vector.broadcast %288 : vector<1x32xf32> to vector<16x32xf32>
    %290 = arith.addf %286, %289 : vector<16x32xf32>
    %291 = arith.addf %290, %261 : vector<16x32xf32>
    %c1_127 = arith.constant 1 : index
    %c0_128 = arith.constant 0 : index
    %c0_129 = arith.constant 0 : index
    %292 = vector.load %arg14[%c1_127, %c0_128, %c0_129] : memref<2x1x32xf32, #tpu.memory_space<vmem>>, vector<1x1x32xf32>
    %293 = vector.shape_cast %292 : vector<1x1x32xf32> to vector<1x32xf32>
    %c1_130 = arith.constant 1 : index
    %c0_131 = arith.constant 0 : index
    %c0_132 = arith.constant 0 : index
    %294 = vector.load %arg15[%c1_130, %c0_131, %c0_132] : memref<2x1x32xf32, #tpu.memory_space<vmem>>, vector<1x1x32xf32>
    %295 = vector.shape_cast %294 : vector<1x1x32xf32> to vector<1x32xf32>
    %cst_133 = arith.constant dense<0.000000e+00> : vector<16xf32>
    %296 = vector.multi_reduction <add>, %291, %cst_133 [1] : vector<16x32xf32> to vector<16xf32>
    %297 = vector.shape_cast %296 : vector<16xf32> to vector<16x1xf32>
    %cst_134 = arith.constant 3.200000e+01 : f32
    %298 = vector.broadcast %cst_134 : f32 to vector<16x1xf32>
    %299 = arith.divf %297, %298 : vector<16x1xf32>
    %300 = vector.broadcast %299 : vector<16x1xf32> to vector<16x32xf32>
    %301 = arith.subf %291, %300 : vector<16x32xf32>
    %302 = arith.mulf %301, %301 : vector<16x32xf32>
    %cst_135 = arith.constant dense<0.000000e+00> : vector<16xf32>
    %303 = vector.multi_reduction <add>, %302, %cst_135 [1] : vector<16x32xf32> to vector<16xf32>
    %304 = vector.shape_cast %303 : vector<16xf32> to vector<16x1xf32>
    %cst_136 = arith.constant 3.200000e+01 : f32
    %305 = vector.broadcast %cst_136 : f32 to vector<16x1xf32>
    %306 = arith.divf %304, %305 : vector<16x1xf32>
    %307 = vector.broadcast %299 : vector<16x1xf32> to vector<16x32xf32>
    %308 = arith.subf %291, %307 : vector<16x32xf32>
    %cst_137 = arith.constant 9.99999996E-13 : f32
    %309 = vector.broadcast %cst_137 : f32 to vector<16x1xf32>
    %310 = arith.addf %306, %309 : vector<16x1xf32>
    %311 = math.rsqrt %310 : vector<16x1xf32>
    %312 = vector.broadcast %311 : vector<16x1xf32> to vector<16x32xf32>
    %313 = arith.mulf %308, %312 : vector<16x32xf32>
    %314 = vector.broadcast %293 : vector<1x32xf32> to vector<16x32xf32>
    %315 = arith.mulf %313, %314 : vector<16x32xf32>
    %316 = vector.broadcast %295 : vector<1x32xf32> to vector<16x32xf32>
    %317 = arith.addf %315, %316 : vector<16x32xf32>
    %c0_138 = arith.constant 0 : index
    %c0_139 = arith.constant 0 : index
    %318 = vector.load %arg22[%c0_138, %c0_139] : memref<16x32xf32, #tpu.memory_space<vmem>>, vector<16x32xf32>
    tpu.vector_store %arg22[%c0_138, %c0_139], %317 {strides = array<i32>} : memref<16x32xf32, #tpu.memory_space<vmem>>, vector<16x32xf32>,
    %c0_140 = arith.constant 0 : index
    %c0_141 = arith.constant 0 : index
    %319 = vector.load %arg16[%c0_140, %c0_141] : memref<32x32xbf16, #tpu.memory_space<vmem>>, vector<32x32xbf16>
    %320 = arith.truncf %317 : vector<16x32xf32> to vector<16x32xbf16>
    %cst_142 = arith.constant dense<0.000000e+00> : vector<16x32xf32>
    %321 = tpu.matmul %320, %319, %cst_142 {dimension_numbers = #tpu.dot_dimension_numbers<[1], [0], [0], [1], [0, 0, 1, 1], [], []>} : vector<16x32xbf16>, vector<32x32xbf16>, vector<16x32xf32> -> vector<16x32xf32>
    %c0_143 = arith.constant 0 : index
    %c0_144 = arith.constant 0 : index
    %322 = vector.load %arg17[%c0_143, %c0_144] : memref<1x32xf32, #tpu.memory_space<vmem>>, vector<1x32xf32>
    %323 = vector.broadcast %322 : vector<1x32xf32> to vector<16x32xf32>
    %324 = arith.addf %321, %323 : vector<16x32xf32>
    %cst_145 = arith.constant 5.000000e-01 : f32
    %325 = vector.broadcast %cst_145 : f32 to vector<16x32xf32>
    %326 = arith.mulf %325, %324 : vector<16x32xf32>
    %cst_146 = arith.constant 4.471500e-02 : f32
    %327 = vector.broadcast %cst_146 : f32 to vector<16x32xf32>
    %328 = arith.mulf %327, %324 : vector<16x32xf32>
    %329 = arith.mulf %328, %324 : vector<16x32xf32>
    %330 = arith.mulf %329, %324 : vector<16x32xf32>
    %331 = arith.addf %324, %330 : vector<16x32xf32>
    %cst_147 = arith.constant 0.797884583 : f32
    %332 = vector.broadcast %cst_147 : f32 to vector<16x32xf32>
    %333 = arith.mulf %332, %331 : vector<16x32xf32>
    %334 = math.tanh %333 : vector<16x32xf32>
    %cst_148 = arith.constant 1.000000e+00 : f32
    %335 = vector.broadcast %cst_148 : f32 to vector<16x32xf32>
    %336 = arith.addf %335, %334 : vector<16x32xf32>
    %337 = arith.mulf %326, %336 : vector<16x32xf32>
    %c0_149 = arith.constant 0 : index
    %c0_150 = arith.constant 0 : index
    %338 = vector.load %arg18[%c0_149, %c0_150] : memref<1x32xf32, #tpu.memory_space<vmem>>, vector<1x32xf32>
    %c0_151 = arith.constant 0 : index
    %c0_152 = arith.constant 0 : index
    %339 = vector.load %arg19[%c0_151, %c0_152] : memref<1x32xf32, #tpu.memory_space<vmem>>, vector<1x32xf32>
    %cst_153 = arith.constant dense<0.000000e+00> : vector<16xf32>
    %340 = vector.multi_reduction <add>, %337, %cst_153 [1] : vector<16x32xf32> to vector<16xf32>
    %341 = vector.shape_cast %340 : vector<16xf32> to vector<16x1xf32>
    %cst_154 = arith.constant 3.200000e+01 : f32
    %342 = vector.broadcast %cst_154 : f32 to vector<16x1xf32>
    %343 = arith.divf %341, %342 : vector<16x1xf32>
    %344 = vector.broadcast %343 : vector<16x1xf32> to vector<16x32xf32>
    %345 = arith.subf %337, %344 : vector<16x32xf32>
    %346 = arith.mulf %345, %345 : vector<16x32xf32>
    %cst_155 = arith.constant dense<0.000000e+00> : vector<16xf32>
    %347 = vector.multi_reduction <add>, %346, %cst_155 [1] : vector<16x32xf32> to vector<16xf32>
    %348 = vector.shape_cast %347 : vector<16xf32> to vector<16x1xf32>
    %cst_156 = arith.constant 3.200000e+01 : f32
    %349 = vector.broadcast %cst_156 : f32 to vector<16x1xf32>
    %350 = arith.divf %348, %349 : vector<16x1xf32>
    %351 = vector.broadcast %343 : vector<16x1xf32> to vector<16x32xf32>
    %352 = arith.subf %337, %351 : vector<16x32xf32>
    %cst_157 = arith.constant 9.99999996E-13 : f32
    %353 = vector.broadcast %cst_157 : f32 to vector<16x1xf32>
    %354 = arith.addf %350, %353 : vector<16x1xf32>
    %355 = math.rsqrt %354 : vector<16x1xf32>
    %356 = vector.broadcast %355 : vector<16x1xf32> to vector<16x32xf32>
    %357 = arith.mulf %352, %356 : vector<16x32xf32>
    %358 = vector.broadcast %338 : vector<1x32xf32> to vector<16x32xf32>
    %359 = arith.mulf %357, %358 : vector<16x32xf32>
    %360 = vector.broadcast %339 : vector<1x32xf32> to vector<16x32xf32>
    %361 = arith.addf %359, %360 : vector<16x32xf32>
    %c0_158 = arith.constant 0 : index
    %c0_159 = arith.constant 0 : index
    %362 = vector.load %arg20[%c0_158, %c0_159] : memref<256x32xbf16, #tpu.memory_space<vmem>>, vector<256x32xbf16>
    %363 = arith.truncf %361 : vector<16x32xf32> to vector<16x32xbf16>
    %cst_160 = arith.constant dense<0.000000e+00> : vector<16x256xf32>
    %364 = tpu.matmul %363, %362, %cst_160 {dimension_numbers = #tpu.dot_dimension_numbers<[1], [1], [0], [0], [0, 0, 1, 0], [], []>} : vector<16x32xbf16>, vector<256x32xbf16>, vector<16x256xf32> -> vector<16x256xf32>
    %c0_161 = arith.constant 0 : index
    %c0_162 = arith.constant 0 : index
    %365 = vector.load %arg21[%c0_161, %c0_162] : memref<1x256xf32, #tpu.memory_space<vmem>>, vector<1x256xf32>
    %366 = vector.broadcast %365 : vector<1x256xf32> to vector<16x256xf32>
    %367 = arith.addf %364, %366 : vector<16x256xf32>
    %c0_163 = arith.constant 0 : index
    %c0_164 = arith.constant 0 : index
    %368 = vector.load %arg23[%c0_163, %c0_164] : memref<16x256xf32, #tpu.memory_space<vmem>>, vector<16x256xf32>
    tpu.vector_store %arg23[%c0_163, %c0_164], %367 {strides = array<i32>} : memref<16x256xf32, #tpu.memory_space<vmem>>, vector<16x256xf32>,
    return
  }
}

</mosaic_0001>

<bundles_post_ra>
// kernel: transformer_pvp_forward.1
= control target key start
LH: loop header
LB: loop body
LE: loop exit
PB: predicated region body
PF: predicated region fallthrough
CT: control target
= control target key end

     0   :  { %vm78_vm0 = vcmask 261120   ;;  %v2306_v15 = vmov 0.0   ;;  %vm2307_vm1 = vmmov 0   ;;  %s2310_s26 = smov 112   ;;  %vm200_vm2 = vcmask 130048   ;;  %s2848_s0 = inlined_call_operand.vmem [shape: f32[16,32], index: 0, kind: input, shape index: {}]   ;;  %s2849_s4 = inlined_call_operand.vmem [shape: bf16[2,32,96], index: 4, kind: input, shape index: {}]   ;;  %s2850_s2 = inlined_call_operand.vmem [shape: f32[1,32], index: 2, kind: input, shape index: {}]   ;;  %s2851_s3 = inlined_call_operand.vmem [shape: f32[1,32], index: 3, kind: input, shape index: {}]   ;;  %s2852_s5 = inlined_call_operand.vmem [shape: f32[2,1,96], index: 5, kind: input, shape index: {}]   ;;  %s2853_s1 = inlined_call_operand.vmem [shape: f32[16,16], index: 1, kind: input, shape index: {}]   ;;  %s2854_s6 = inlined_call_operand.vmem [shape: bf16[2,32,32], index: 6, kind: input, shape index: {}]   ;;  %s2855_s7 = inlined_call_operand.vmem [shape: f32[2,1,32], index: 7, kind: input, shape index: {}]   ;;  %s2856_s10 = inlined_call_operand.vmem [shape: bf16[2,32,64], index: 10, kind: input, shape index: {}]   ;;  %s2857_s8 = inlined_call_operand.vmem [shape: f32[2,1,32], index: 8, kind: input, shape index: {}]   ;;  %s2858_s9 = inlined_call_operand.vmem [shape: f32[2,1,32], index: 9, kind: input, shape index: {}]   ;;  %s2859_s12 = inlined_call_operand.vmem [shape: bf16[2,64,32], index: 12, kind: input, shape index: {}]   ;;  %s2860_s11 = inlined_call_operand.vmem [shape: f32[2,1,64], index: 11, kind: input, shape index: {}]   ;;  %s2861_s13 = inlined_call_operand.vmem [shape: f32[2,1,32], index: 13, kind: input, shape index: {}]   ;;  %s2862_s14 = inlined_call_operand.vmem [shape: f32[2,1,32], index: 14, kind: input, shape index: {}]   ;;  %s2863_s15 = inlined_call_operand.vmem [shape: f32[2,1,32], index: 15, kind: input, shape index: {}]   ;;  %s2864_s16 = inlined_call_operand.vmem [shape: bf16[32,32], index: 16, kind: input, shape index: {}]   ;;  %s2865_s22 = inlined_call_operand.vmem [shape: f32[16,32], index: 22, kind: output, shape index: {0}]   ;;  %s2866_s17 = inlined_call_operand.vmem [shape: f32[1,32], index: 17, kind: input, shape index: {}]   ;;  %s2867_s20 = inlined_call_operand.vmem [shape: bf16[256,32], index: 20, kind: input, shape index: {}]   ;;  %s2868_s18 = inlined_call_operand.vmem [shape: f32[1,32], index: 18, kind: input, shape index: {}]   ;;  %s2869_s19 = inlined_call_operand.vmem [shape: f32[1,32], index: 19, kind: input, shape index: {}]   ;;  %s2870_s21 = inlined_call_operand.vmem [shape: f32[1,256], index: 21, kind: input, shape index: {}]   ;;  %s2871_s23 = inlined_call_operand.vmem [shape: f32[16,256], index: 23, kind: output, shape index: {1}]  }
   0x1   :  { %2880 = sst [smem:[#allocation2_spill]] %s2848_s0  ;;  %2049 = vmatprep.subr.bf16.mxu0 %v2306_v15  ;;  %2081 = vmatprep.subr.bf16.mxu1 %v2306_v15  ;;  %s2879_s0 = smov 48   ;;  %vm722_vm3 = vcmask 523264  }
   0x2   :  { %2881 = sst [smem:[#allocation3_spill]] %s2849_s4  ;;  %s2888_s24 = sld [smem:[#allocation2_spill]]  ;;  %2053 = vmatprep.mubr.msk.bf16.mxu0 %vm2307_vm1, %v2306_v15  ;;  %2083 = vmatprep.mubr.msk.bf16.mxu1 %vm2307_vm1, %v2306_v15 }
   0x3   :  { %2882 = sst [smem:[#allocation4_spill]] %s2850_s2  ;;  %s2889_s2 = sld [smem:[#allocation3_spill]] }
   0x4   :  { %2883 = sst [smem:[#allocation5_spill]] %s2851_s3  ;;  %s2890_s29 = sld [smem:[#allocation4_spill]] }
   0x5   :  { %2884 = sst [smem:[#allocation6_spill]] %s2852_s5  ;;  %s2891_s5 = sld [smem:[#allocation5_spill]] }
   0x6   :  { %2885 = sst [smem:[#allocation7_spill]] %s2853_s1  ;;  %s2892_s25 = sld [smem:[#allocation6_spill]] }
   0x7   :  { %2886 = sst [smem:[#allocation8_spill]] %s2854_s6  ;;  %s2308_s1 = smov 96  }
   0x8   :  { %2887 = sst [smem:[#allocation9_spill]] %s2855_s7  ;;  %v74_v0 = vld [vmem:[%s2888_s24] sm:$0xff]  ;;  %v75_v1 = vld [vmem:[%s2888_s24 + $0x8] sm:$0xff]  ;;  %s2309_s4 = smov 80  }
   0x9   :  { %v79_v2 = vsel %vm78_vm0, %v74_v0, 0.0  ;;  %v82_v3 = vsel %vm78_vm0, %v75_v1, 0.0  ;;  %v2200_v14 = vld [vmem:[%s2889_s2] sm:$0xff]   ;;  %v2201_v16 = vld [vmem:[%s2889_s2 + $0x8] sm:$0xff]   ;;  %s2893_s7 = sld [smem:[#allocation7_spill]]  ;;  %s2878_s3 = smov 64  }
   0xa   :  { %80 = vadd.xlane.f32.xlu0 %v79_v2  ;;  %2050 = vmatpush3.bf16.msra.mxu0 %v2200_v14  ;;  %v1875_v25 = vld [vmem:[%s2890_s29] ss:$0 sm:$0xff]  ;;  %s2894_s24 = sld [smem:[#allocation8_spill]]  ;;  %s2895_s29 = sld [smem:[#allocation9_spill]] }
   0xb   :  { %2051 = vmatprep.subr.bf16.mxu0 %v2306_v15  ;;  %v1876_v29 = vld [vmem:[%s2891_s5] ss:$0 sm:$0xff] }
   0xc   :  { %v1877_v34 = vld [vmem:[%s2892_s25] ss:$0 sm:$0xff] }
   0xe   :  { %83 = vadd.xlane.f32.xlu0 %v82_v3  ;;  %2052 = vmatpush3.bf16.msra.mxu0 %v2201_v16 }
   0xf   :  { %2057 = vmatprep.subr.bf16.mxu0 %v2306_v15  ;;  %v2492_v44 = vld [vmem:[%s2893_s7] sm:$0xff]  ;;  %v2497_v46 = vld [vmem:[%s2893_s7 + $0x8] sm:$0xff] }
  0x97   :  { %v81_v4 = vpop.xlane.xlu0 %80 }
  0x98   :  { %v86_v5 = vmul.f32 0.03125, %v81_v4 }
  0x9a   :  { %v88_v6 = vsub.f32 %v74_v0, %v86_v5 }
  0x9b   :  { %v84_v7 = vpop.xlane.xlu0 %83 }
  0x9c   :  { %v87_v8 = vmul.f32 0.03125, %v84_v7  ;;  %v90_v9 = vmul.f32 %v88_v6, %v88_v6 }
  0x9e   :  { %v89_v10 = vsub.f32 %v75_v1, %v87_v8  ;;  %v92_v11 = vsel %vm78_vm0, %v90_v9, 0.0 }
  0x9f   :  { %93 = vadd.xlane.f32.xlu1 %v92_v11 }
  0xa0   :  { %v91_v12 = vmul.f32 %v89_v10, %v89_v10 }
  0xa2   :  { %v95_v13 = vsel %vm78_vm0, %v91_v12, 0.0 }
  0xa3   :  { %96 = vadd.xlane.f32.xlu1 %v95_v13 }
 0x12c   :  { %v94_v17 = vpop.xlane.xlu1 %93 }
 0x12d   :  { %v98_v18 = vmul.f32 0.03125, %v94_v17 }
 0x12f   :  { %v100_v19 = vadd.f32 1e-12, %v98_v18 }
 0x130   :  { %v97_v20 = vpop.xlane.xlu1 %96 }
 0x131   :  { %2238 = vrsqrt.f32 %v100_v19  ;;  %v99_v21 = vmul.f32 0.03125, %v97_v20 }
 0x133   :  { %v101_v22 = vadd.f32 1e-12, %v99_v21 }
 0x135   :  { %2240 = vrsqrt.f32 %v101_v22 }
 0x13b   :  { %v2239_v23 = vpop.eup %2238 }
 0x13c   :  { %v104_v24 = vmul.f32 %v2239_v23, %v88_v6 }
 0x13e   :  { %v112_v28 = vmul.f32 %v1875_v25, %v104_v24 }
 0x13f   :  { %v2241_v26 = vpop.eup %2240 }
 0x140   :  { %v105_v27 = vmul.f32 %v2241_v26, %v89_v10  ;;  %v2463_v31 = vadd.f32 %v1876_v29, %v112_v28 }
 0x142   :  { %v113_v30 = vmul.f32 %v1875_v25, %v105_v27 }
 0x144   :  { %v2465_v32 = vadd.f32 %v1876_v29, %v113_v30 }
 0x146   :  { %v128_v33 = vpack.c.bf16 %v2465_v32, %v2463_v31 }
 0x148   :  { %2054 = vmatmul.mubr.msk.bf16.vlgmr.msra.gmra.mrb[0].mxu0 %vm78_vm0, %v128_v33 }
 0x149   :  { %2059 = vmatprep.mubr.msk.bf16.mxu0 %vm2307_vm1, %v2306_v15 }
 0x21b   :  { %v185_v35 = vpop.f32.mrb[0].mxu0 }
 0x21c   :  { %v2055_v36 = vpop.f32.mrb[1].mxu0  ;;  %v186_v38 = vadd.f32 %v1877_v34, %v185_v35 }
 0x21d   :  { %v188_v37 = vpop.f32.mrb[2].mxu0 }
 0x21e   :  { %v189_v39 = vadd.f32 %v1877_v34, %v188_v37  ;;  %v2056_v40 = vpop.f32.mrb[3].mxu0 }
 0x220   :  { %v2475_v41 = vpack.c.bf16 %v189_v39, %v186_v38 }
 0x222   :  { %198 = vrot.lane.b32.xlu0 %v2475_v41, %s2308_s1 }
 0x226   :  { %321 = vrot.lane.b32.xlu0 %v2475_v41, %s2309_s4 }
 0x22a   :  { %319 = vrot.lane.b32.xlu0 %v2475_v41, %s2310_s26 }
 0x294   :  { %v199_v42 = vpop.permute.xlu0 %198 }
 0x295   :  { %v205_v43 = vsel %vm200_vm2, %v199_v42, 0 }
 0x296   :  { %2058 = vmatpush3.bf16.xpose.msra.mxu0 %v205_v43 }
 0x297   :  { %2063 = vmatprep.subr.bf16.mxu0 %v2306_v15 }
 0x298   :  { %v322_v7 = vpop.permute.xlu0 %321 }
 0x299   :  { %v327_v9 = vsel %vm200_vm2, %v322_v7, 0 }
 0x29c   :  { %v320_v10 = vpop.permute.xlu0 %319 }
 0x29d   :  { %2060 = vmatmul.mubr.msk.bf16.vlgmr.msra.gmra.mrb[4].mxu0 %vm200_vm2, %v2475_v41 }
 0x29e   :  { %2065 = vmatprep.mubr.msk.bf16.mxu0 %vm2307_vm1, %v2306_v15 }
 0x370   :  { %v241_v45 = vpop.f32.mrb[4].mxu0 }
 0x371   :  { %v242_v47 = vadd.f32 %v241_v45, %v2492_v44  ;;  %v2061_v48 = vpop.f32.mrb[5].mxu0 }
 0x372   :  { %v244_v49 = vpop.f32.mrb[6].mxu0 }
 0x373   :  { %v245_v50 = vadd.f32 %v244_v49, %v2497_v46  ;;  %v2062_v51 = vpop.f32.mrb[7].mxu0  ;;  %v248_v52 = vsel %vm200_vm2, %v242_v47, -inf }
 0x374   :  { %249 = vmax.xlane.f32.xlu1 %v248_v52 }
 0x375   :  { %v251_v53 = vsel %vm200_vm2, %v245_v50, -inf }
 0x378   :  { %252 = vmax.xlane.f32.xlu1 %v251_v53 }
 0x401   :  { %v250_v54 = vpop.xlane.xlu1 %249 }
 0x402   :  { %v254_v55 = vsub.f32 %v242_v47, %v250_v54  ;;  %v2202_v47 = vld [vmem:[%s2894_s24] sm:$0xff]  }
 0x404   :  { %v256_v56 = vmul.f32 1.442695, %v254_v55 }
 0x405   :  { %v253_v57 = vpop.xlane.xlu1 %252 }
 0x406   :  { %2242 = vpow2.f32 %v256_v56  ;;  %v255_v58 = vsub.f32 %v245_v50, %v253_v57 }
 0x408   :  { %v258_v59 = vmul.f32 1.442695, %v255_v58 }
 0x40a   :  { %2244 = vpow2.f32 %v258_v59  ;;  %v1889_v59 = vld [vmem:[%s2895_s29] ss:$0 sm:$0xff] }
 0x410   :  { %v2243_v60 = vpop.eup %2242 }
 0x411   :  { %v260_v61 = vsel %vm200_vm2, %v2243_v60, 0.0 }
 0x412   :  { %261 = vadd.xlane.f32.xlu1 %v260_v61 }
 0x414   :  { %v2245_v62 = vpop.eup %2244 }
 0x415   :  { %v263_v63 = vsel %vm200_vm2, %v2245_v62, 0.0 }
 0x416   :  { %264 = vadd.xlane.f32.xlu1 %v263_v63 }
 0x427   :  { %271 = vrot.lane.b32.xlu1 %v2475_v41, %s2878_s3 }
 0x49f   :  { %v262_v0 = vpop.xlane.xlu1 %261 }
 0x4a0   :  { %2246 = vrcp.f32 %v262_v0 }
 0x4a3   :  { %v265_v1 = vpop.xlane.xlu1 %264 }
 0x4a4   :  { %2248 = vrcp.f32 %v265_v1 }
 0x4a7   :  { %v272_v2 = vpop.permute.xlu1 %271 }
 0x4a8   :  { %2064 = vmatpush3.bf16.msra.mxu0 %v272_v2 }
 0x4a9   :  { %2069 = vmatprep.subr.bf16.mxu0 %v2306_v15 }
 0x4aa   :  { %v2247_v3 = vpop.eup %2246 }
 0x4ab   :  { %v268_v5 = vmul.f32 %v2247_v3, %v2243_v60 }
 0x4ae   :  { %v2249_v4 = vpop.eup %2248 }
 0x4af   :  { %v269_v6 = vmul.f32 %v2249_v4, %v2245_v62 }
 0x4b1   :  { %v270_v8 = vpack.c.bf16 %v269_v6, %v268_v5 }
 0x4b3   :  { %2066 = vmatmul.mubr.msk.bf16.vlgmr.msra.gmra.mrb[8].mxu0 %vm200_vm2, %v270_v8 }
 0x4b4   :  { %2070 = vmatpush3.bf16.xpose.msra.mxu0 %v327_v9  ;;  %2071 = vmatprep.mubr.msk.bf16.mxu0 %vm2307_vm1, %v2306_v15 }
 0x4b5   :  { %2075 = vmatprep.subr.bf16.mxu0 %v2306_v15 }
 0x4bb   :  { %2072 = vmatmul.mubr.msk.bf16.vlgmr.msra.gmra.mrb[12].mxu0 %vm200_vm2, %v320_v10 }
 0x4bc   :  { %2077 = vmatprep.mubr.msk.bf16.mxu0 %vm2307_vm1, %v2306_v15 }
 0x586   :  { %v311_v11 = vpop.f32.mrb[8].mxu0 }
 0x587   :  { %v2067_v12 = vpop.f32.mrb[9].mxu0 }
 0x588   :  { %v314_v13 = vpop.f32.mrb[10].mxu0 }
 0x589   :  { %v318_v14 = vpack.c.bf16 %v314_v13, %v311_v11  ;;  %v2068_v16 = vpop.f32.mrb[11].mxu0 }
 0x58e   :  { %v363_v17 = vpop.f32.mrb[12].mxu0 }
 0x58f   :  { %v364_v18 = vadd.f32 %v363_v17, %v2492_v44  ;;  %v2073_v19 = vpop.f32.mrb[13].mxu0  ;;  %v2205_v17 = vld [vmem:[%s2856_s10 + $0x8] sm:$0xff]  }
 0x590   :  { %v366_v20 = vpop.f32.mrb[14].mxu0 }
 0x591   :  { %v367_v21 = vadd.f32 %v366_v20, %v2497_v46  ;;  %v2074_v22 = vpop.f32.mrb[15].mxu0  ;;  %v370_v23 = vsel %vm200_vm2, %v364_v18, -inf }
 0x592   :  { %371 = vmax.xlane.f32.xlu0 %v370_v23 }
 0x593   :  { %v373_v24 = vsel %vm200_vm2, %v367_v21, -inf }
 0x594   :  { %374 = vmax.xlane.f32.xlu1 %v373_v24 }
 0x61f   :  { %v372_v25 = vpop.xlane.xlu0 %371 }
 0x620   :  { %v376_v26 = vsub.f32 %v364_v18, %v372_v25 }
 0x621   :  { %v375_v27 = vpop.xlane.xlu1 %374 }
 0x622   :  { %v378_v28 = vmul.f32 1.442695, %v376_v26  ;;  %v377_v29 = vsub.f32 %v367_v21, %v375_v27  ;;  %v1890_v26 = vld [vmem:[%s2857_s8] ss:$0 sm:$0xff] }
 0x624   :  { %2250 = vpow2.f32 %v378_v28  ;;  %v380_v30 = vmul.f32 1.442695, %v377_v29 }
 0x626   :  { %2252 = vpow2.f32 %v380_v30  ;;  %v1891_v30 = vld [vmem:[%s2858_s9] ss:$0 sm:$0xff] }
 0x62e   :  { %v2251_v33 = vpop.eup %2250 }
 0x62f   :  { %v382_v34 = vsel %vm200_vm2, %v2251_v33, 0.0 }
 0x630   :  { %v2253_v35 = vpop.eup %2252  ;;  %383 = vadd.xlane.f32.xlu0 %v382_v34 }
 0x631   :  { %v385_v36 = vsel %vm200_vm2, %v2253_v35, 0.0 }
 0x634   :  { %386 = vadd.xlane.f32.xlu0 %v385_v36 }
 0x64a   :  { %393 = vrot.lane.b32.xlu0 %v2475_v41, %s2879_s0  ;;  %v2203_v41 = vld [vmem:[%s2894_s24 + $0x8] sm:$0xff]  }
 0x64b   :  { %2082 = vmatpush3.bf16.msra.mxu1 %v2203_v41 }
 0x64c   :  { %2113 = vmatprep.subr.bf16.mxu1 %v2306_v15 }
 0x6bd   :  { %v384_v37 = vpop.xlane.xlu0 %383 }
 0x6be   :  { %2254 = vrcp.f32 %v384_v37  ;;  %v2206_v37 = vld [vmem:[%s2859_s12] sm:$0xff]  }
 0x6c1   :  { %v387_v38 = vpop.xlane.xlu0 %386 }
 0x6c2   :  { %2256 = vrcp.f32 %v387_v38  ;;  %v2207_v38 = vld [vmem:[%s2859_s12 + $0x8] sm:$0xff]  }
 0x6c5   :  { %v394_v39 = vpop.permute.xlu0 %393 }
 0x6c6   :  { %2076 = vmatpush3.bf16.msra.mxu0 %v394_v39  ;;  %v2208_v39 = vld [vmem:[%s2859_s12 + $0x10] sm:$0xff]  }
 0x6c7   :  { %2087 = vmatprep.subr.bf16.mxu0 %v2306_v15 }
 0x6c8   :  { %v2255_v40 = vpop.eup %2254 }
 0x6c9   :  { %v390_v43 = vmul.f32 %v2255_v40, %v2251_v33  ;;  %v2209_v40 = vld [vmem:[%s2859_s12 + $0x18] sm:$0xff]  }
 0x6cc   :  { %v2257_v42 = vpop.eup %2256 }
 0x6cd   :  { %v391_v45 = vmul.f32 %v2257_v42, %v2253_v35  ;;  %v1892_v42 = vld [vmem:[%s2860_s11] ss:$0 sm:$0xff] }
 0x6cf   :  { %v392_v48 = vpack.c.bf16 %v391_v45, %v390_v43 }
 0x6d1   :  { %2078 = vmatmul.mubr.msk.bf16.vlgmr.msra.gmra.mrb[16].mxu0 %vm200_vm2, %v392_v48 }
 0x6d2   :  { %2088 = vmatpush3.bf16.msra.mxu0 %v2202_v47  ;;  %2089 = vmatprep.mubr.msk.bf16.mxu0 %vm2307_vm1, %v2306_v15 }
 0x6d3   :  { %2093 = vmatprep.subr.bf16.mxu0 %v2306_v15 }
 0x6d9   :  { %2090 = vmatmul.mubr.msk.bf16.vlgmr.msra.gmra.mrb[20].mxu0 %vm200_vm2, %v318_v14 }
 0x6da   :  { %2097 = vmatprep.mubr.msk.bf16.mxu0 %vm2307_vm1, %v2306_v15 }
 0x7a4   :  { %v433_v49 = vpop.f32.mrb[16].mxu0 }
 0x7a5   :  { %v2079_v50 = vpop.f32.mrb[17].mxu0 }
 0x7a6   :  { %v436_v51 = vpop.f32.mrb[18].mxu0 }
 0x7a7   :  { %v440_v52 = vpack.c.bf16 %v436_v51, %v433_v49  ;;  %v2080_v53 = vpop.f32.mrb[19].mxu0 }
 0x7a9   :  { %2084 = vmatmul.mubr.msk.bf16.vlgmr.msra.gmra.mrb[0].mxu1 %vm200_vm2, %v440_v52 }
 0x7aa   :  { %2117 = vmatprep.mubr.msk.bf16.mxu1 %vm2307_vm1, %v2306_v15 }
 0x7ac   :  { %v534_v54 = vpop.f32.mrb[20].mxu0 }
 0x7ad   :  { %v2091_v55 = vpop.f32.mrb[21].mxu0 }
 0x7ae   :  { %v537_v56 = vpop.f32.mrb[22].mxu0 }
 0x7af   :  { %v2092_v57 = vpop.f32.mrb[23].mxu0 }
 0x87c   :  { %v484_v58 = vpop.f32.mrb[0].mxu1 }
 0x87d   :  { %v535_v60 = vadd.f32 %v534_v54, %v484_v58  ;;  %v2085_v61 = vpop.f32.mrb[1].mxu1 }
 0x87e   :  { %v487_v62 = vpop.f32.mrb[2].mxu1 }
 0x87f   :  { %v548_v63 = vadd.f32 %v1889_v59, %v535_v60  ;;  %v538_v0 = vadd.f32 %v537_v56, %v487_v62  ;;  %v2086_v1 = vpop.f32.mrb[3].mxu1 }
 0x881   :  { %v549_v2 = vadd.f32 %v1889_v59, %v538_v0  ;;  %v550_v3 = vadd.f32 %v548_v63, %v2463_v31 }
 0x883   :  { %v554_v4 = vsel %vm78_vm0, %v550_v3, 0.0  ;;  %v551_v5 = vadd.f32 %v549_v2, %v2465_v32  ;;  %v2204_v32 = vld [vmem:[%s2856_s10] sm:$0xff]  }
 0x884   :  { %555 = vadd.xlane.f32.xlu1 %v554_v4  ;;  %2094 = vmatpush3.bf16.msra.mxu0 %v2204_v32 }
 0x885   :  { %v557_v6 = vsel %vm78_vm0, %v551_v5, 0.0  ;;  %2095 = vmatprep.subr.bf16.mxu0 %v2306_v15 }
 0x888   :  { %558 = vadd.xlane.f32.xlu1 %v557_v6  ;;  %2096 = vmatpush3.bf16.msra.mxu0 %v2205_v17 }
 0x889   :  { %2101 = vmatprep.subr.bf16.mxu0 %v2306_v15 }
 0x911   :  { %v556_v7 = vpop.xlane.xlu1 %555 }
 0x912   :  { %v560_v8 = vmul.f32 0.03125, %v556_v7 }
 0x914   :  { %v562_v9 = vsub.f32 %v550_v3, %v560_v8 }
 0x915   :  { %v559_v10 = vpop.xlane.xlu1 %558 }
 0x916   :  { %v561_v11 = vmul.f32 0.03125, %v559_v10  ;;  %v564_v12 = vmul.f32 %v562_v9, %v562_v9 }
 0x918   :  { %v563_v13 = vsub.f32 %v551_v5, %v561_v11  ;;  %v566_v14 = vsel %vm78_vm0, %v564_v12, 0.0  ;;  %v1896_v5 = vld [vmem:[%s2861_s13] ss:$0 sm:$0xff] }
 0x919   :  { %567 = vadd.xlane.f32.xlu1 %v566_v14 }
 0x91a   :  { %v565_v16 = vmul.f32 %v563_v13, %v563_v13 }
 0x91c   :  { %v569_v31 = vsel %vm78_vm0, %v565_v16, 0.0 }
 0x91d   :  { %570 = vadd.xlane.f32.xlu1 %v569_v31 }
 0x9a6   :  { %v568_v18 = vpop.xlane.xlu1 %567 }
 0x9a7   :  { %v572_v19 = vmul.f32 0.03125, %v568_v18 }
 0x9a9   :  { %v574_v20 = vadd.f32 1e-12, %v572_v19 }
 0x9aa   :  { %v571_v21 = vpop.xlane.xlu1 %570 }
 0x9ab   :  { %2258 = vrsqrt.f32 %v574_v20  ;;  %v573_v22 = vmul.f32 0.03125, %v571_v21 }
 0x9ad   :  { %v575_v23 = vadd.f32 1e-12, %v573_v22 }
 0x9af   :  { %2260 = vrsqrt.f32 %v575_v23 }
 0x9b5   :  { %v2259_v24 = vpop.eup %2258 }
 0x9b6   :  { %v578_v25 = vmul.f32 %v2259_v24, %v562_v9 }
 0x9b8   :  { %v586_v28 = vmul.f32 %v1890_v26, %v578_v25  ;;  %v2210_v25 = vld [vmem:[%s2889_s2 + $0x10] sm:$0xff]  }
 0x9b9   :  { %v2261_v27 = vpop.eup %2260  ;;  %2114 = vmatpush3.bf16.msra.mxu1 %v2210_v25 }
 0x9ba   :  { %v579_v29 = vmul.f32 %v2261_v27, %v563_v13  ;;  %v594_v34 = vadd.f32 %v1891_v30, %v586_v28  ;;  %2115 = vmatprep.subr.bf16.mxu1 %v2306_v15 }
 0x9bc   :  { %v587_v33 = vmul.f32 %v1890_v26, %v579_v29  ;;  %v2211_v26 = vld [vmem:[%s2889_s2 + $0x18] sm:$0xff]  }
 0x9bd   :  { %2116 = vmatpush3.bf16.msra.mxu1 %v2211_v26 }
 0x9be   :  { %v595_v35 = vadd.f32 %v1891_v30, %v587_v33  ;;  %2121 = vmatprep.subr.bf16.mxu1 %v2306_v15 }
 0x9c0   :  { %v600_v36 = vpack.c.bf16 %v595_v35, %v594_v34 }
 0x9c2   :  { %2098 = vmatmul.mubr.msk.bf16.vlgmr.msra.gmra.mrb[24].mxu0 %vm78_vm0, %v600_v36 }
 0x9c3   :  { %2109 = vmatprep.mubr.msk.bf16.mxu0 %vm2307_vm1, %v2306_v15  ;;  %2102 = vmatpush3.bf16.msra.mxu0 %v2206_v37  ;;  %v1902_v37 = vld [vmem:[%s2862_s14] ss:$0 sm:$0xff] }
 0x9c4   :  { %2103 = vmatprep.subr.bf16.mxu0 %v2306_v15 }
 0x9c7   :  { %2104 = vmatpush3.bf16.msra.mxu0 %v2207_v38 }
 0x9c8   :  { %2105 = vmatprep.subr.bf16.mxu0 %v2306_v15 }
 0x9cb   :  { %2106 = vmatpush3.bf16.msra.mxu0 %v2208_v39 }
 0x9cc   :  { %2107 = vmatprep.subr.bf16.mxu0 %v2306_v15 }
 0x9cf   :  { %2108 = vmatpush3.bf16.msra.mxu0 %v2209_v40 }
 0x9d0   :  { %2127 = vmatprep.subr.bf16.mxu0 %v2306_v15 }
 0xa95   :  { %v657_v43 = vpop.f32.mrb[24].mxu0 }
 0xa96   :  { %v658_v45 = vadd.f32 %v1892_v42, %v657_v43  ;;  %v2099_v47 = vpop.f32.mrb[25].mxu0 }
 0xa97   :  { %v660_v48 = vpop.f32.mrb[26].mxu0 }
 0xa98   :  { %v666_v41 = vmul.f32 0.044715, %v658_v45  ;;  %v661_v49 = vadd.f32 %v1892_v42, %v660_v48  ;;  %v2100_v50 = vpop.f32.mrb[27].mxu0  ;;  %v664_v63 = vmul.f32 0.5, %v658_v45  ;;  %v1903_v42 = vld [vmem:[%s2863_s15] ss:$0 sm:$0xff] }
 0xa9a   :  { %v668_v51 = vmul.f32 %v666_v41, %v658_v45  ;;  %v667_v52 = vmul.f32 0.044715, %v661_v49  ;;  %v665_v0 = vmul.f32 0.5, %v661_v49  ;;  %v1909_v41 = vld [vmem:[%s2892_s25 + $0x1] ss:$0 sm:$0xff]  ;;  %s2896_s25 = smov 48  }
 0xa9c   :  { %v670_v53 = vmul.f32 %v668_v51, %v658_v45  ;;  %v669_v54 = vmul.f32 %v667_v52, %v661_v49 }
 0xa9e   :  { %v672_v55 = vadd.f32 %v670_v53, %v658_v45  ;;  %v671_v56 = vmul.f32 %v669_v54, %v661_v49 }
 0xaa0   :  { %v674_v57 = vmul.f32 0.7978846, %v672_v55  ;;  %v673_v58 = vadd.f32 %v671_v56, %v661_v49 }
 0xaa2   :  { %2262 = vtanh.f32 %v674_v57  ;;  %v675_v59 = vmul.f32 0.7978846, %v673_v58 }
 0xaa4   :  { %2264 = vtanh.f32 %v675_v59 }
 0xaac   :  { %v2263_v60 = vpop.eup %2262 }
 0xaad   :  { %v678_v61 = vadd.f32 1.0, %v2263_v60 }
 0xaae   :  { %v2265_v62 = vpop.eup %2264 }
 0xaaf   :  { %v679_v1 = vadd.f32 1.0, %v2265_v62  ;;  %v680_v2 = vmul.f32 %v678_v61, %v664_v63 }
 0xab1   :  { %v681_v3 = vmul.f32 %v679_v1, %v665_v0 }
 0xab3   :  { %v690_v4 = vpack.c.bf16 %v681_v3, %v680_v2 }
 0xab5   :  { %2110 = vmatmul.mubr.msk.bf16.vlgmr.msra.gmra.mrb[28].mxu0 %vm722_vm3, %v690_v4 }
 0xab6   :  { %2129 = vmatprep.mubr.msk.bf16.mxu0 %vm2307_vm1, %v2306_v15 }
 0xb88   :  { %v760_v6 = vpop.f32.mrb[28].mxu0 }
 0xb89   :  { %v761_v7 = vadd.f32 %v1896_v5, %v760_v6  ;;  %v2111_v8 = vpop.f32.mrb[29].mxu0 }
 0xb8a   :  { %v763_v9 = vpop.f32.mrb[30].mxu0 }
 0xb8b   :  { %v764_v10 = vadd.f32 %v1896_v5, %v763_v9  ;;  %v2112_v11 = vpop.f32.mrb[31].mxu0  ;;  %v767_v12 = vadd.f32 %v761_v7, %v594_v34 }
 0xb8d   :  { %v771_v13 = vsel %vm78_vm0, %v767_v12, 0.0  ;;  %v768_v14 = vadd.f32 %v764_v10, %v595_v35 }
 0xb8e   :  { %772 = vadd.xlane.f32.xlu1 %v771_v13 }
 0xb8f   :  { %v774_v16 = vsel %vm78_vm0, %v768_v14, 0.0 }
 0xb92   :  { %775 = vadd.xlane.f32.xlu1 %v774_v16 }
 0xc1b   :  { %v773_v31 = vpop.xlane.xlu1 %772 }
 0xc1c   :  { %v777_v32 = vmul.f32 0.03125, %v773_v31 }
 0xc1e   :  { %v779_v17 = vsub.f32 %v767_v12, %v777_v32 }
 0xc1f   :  { %v776_v18 = vpop.xlane.xlu1 %775 }
 0xc20   :  { %v778_v19 = vmul.f32 0.03125, %v776_v18  ;;  %v781_v20 = vmul.f32 %v779_v17, %v779_v17 }
 0xc22   :  { %v780_v21 = vsub.f32 %v768_v14, %v778_v19  ;;  %v783_v22 = vsel %vm78_vm0, %v781_v20, 0.0 }
 0xc23   :  { %784 = vadd.xlane.f32.xlu0 %v783_v22 }
 0xc24   :  { %v782_v23 = vmul.f32 %v780_v21, %v780_v21 }
 0xc26   :  { %v786_v24 = vsel %vm78_vm0, %v782_v23, 0.0 }
 0xc27   :  { %787 = vadd.xlane.f32.xlu1 %v786_v24 }
 0xcb0   :  { %v785_v27 = vpop.xlane.xlu0 %784 }
 0xcb1   :  { %v789_v28 = vmul.f32 0.03125, %v785_v27 }
 0xcb3   :  { %v791_v29 = vadd.f32 1e-12, %v789_v28 }
 0xcb4   :  { %v788_v30 = vpop.xlane.xlu1 %787 }
 0xcb5   :  { %2266 = vrsqrt.f32 %v791_v29  ;;  %v790_v33 = vmul.f32 0.03125, %v788_v30 }
 0xcb7   :  { %v792_v34 = vadd.f32 1e-12, %v790_v33 }
 0xcb9   :  { %2268 = vrsqrt.f32 %v792_v34 }
 0xcbf   :  { %v2267_v35 = vpop.eup %2266 }
 0xcc0   :  { %v795_v36 = vmul.f32 %v2267_v35, %v779_v17 }
 0xcc2   :  { %v803_v39 = vmul.f32 %v1902_v37, %v795_v36 }
 0xcc3   :  { %v2269_v38 = vpop.eup %2268 }
 0xcc4   :  { %v796_v40 = vmul.f32 %v2269_v38, %v780_v21  ;;  %v2611_v45 = vadd.f32 %v1903_v42, %v803_v39 }
 0xcc6   :  { %v804_v43 = vmul.f32 %v1902_v37, %v796_v40 }
 0xcc8   :  { %v2613_v47 = vadd.f32 %v1903_v42, %v804_v43 }
 0xcca   :  { %v818_v48 = vpack.c.bf16 %v2613_v47, %v2611_v45 }
 0xccc   :  { %2118 = vmatmul.mubr.msk.bf16.vlgmr.msra.gmra.mrb[4].mxu1 %vm78_vm0, %v818_v48 }
 0xccd   :  { %2123 = vmatprep.mubr.msk.bf16.mxu1 %vm2307_vm1, %v2306_v15 }
 0xd9f   :  { %v876_v49 = vpop.f32.mrb[4].mxu1 }
 0xda0   :  { %v2119_v50 = vpop.f32.mrb[5].mxu1  ;;  %v877_v52 = vadd.f32 %v1909_v41, %v876_v49 }
 0xda1   :  { %v879_v51 = vpop.f32.mrb[6].mxu1 }
 0xda2   :  { %v880_v53 = vadd.f32 %v1909_v41, %v879_v51  ;;  %v2120_v54 = vpop.f32.mrb[7].mxu1 }
 0xda4   :  { %v2623_v55 = vpack.c.bf16 %v880_v53, %v877_v52  ;;  %v2212_v52 = vld [vmem:[%s2894_s24 + $0x10] sm:$0xff]   ;;  %v2213_v53 = vld [vmem:[%s2894_s24 + $0x18] sm:$0xff]  }
 0xda6   :  { %890 = vrot.lane.b32.xlu1 %v2623_v55, %s2308_s1  ;;  %s2897_s1 = smov 64  }
 0xdaa   :  { %1012 = vrot.lane.b32.xlu1 %v2623_v55, %s2309_s4 }
 0xdae   :  { %1010 = vrot.lane.b32.xlu1 %v2623_v55, %s2310_s26 }
 0xe18   :  { %v891_v56 = vpop.permute.xlu1 %890 }
 0xe19   :  { %v896_v57 = vsel %vm200_vm2, %v891_v56, 0 }
 0xe1a   :  { %2122 = vmatpush3.bf16.xpose.msra.mxu1 %v896_v57 }
 0xe1b   :  { %2133 = vmatprep.subr.bf16.mxu1 %v2306_v15 }
 0xe1c   :  { %v1013_v58 = vpop.permute.xlu1 %1012 }
 0xe1d   :  { %v1018_v59 = vsel %vm200_vm2, %v1013_v58, 0 }
 0xe20   :  { %v1011_v60 = vpop.permute.xlu1 %1010 }
 0xe21   :  { %2124 = vmatmul.mubr.msk.bf16.vlgmr.msra.gmra.mrb[8].mxu1 %vm200_vm2, %v2623_v55 }
 0xe22   :  { %2134 = vmatpush3.bf16.xpose.msra.mxu1 %v1018_v59  ;;  %2135 = vmatprep.mubr.msk.bf16.mxu1 %vm2307_vm1, %v2306_v15 }
 0xe23   :  { %2145 = vmatprep.subr.bf16.mxu1 %v2306_v15 }
 0xe29   :  { %2136 = vmatmul.mubr.msk.bf16.vlgmr.msra.gmra.mrb[12].mxu1 %vm200_vm2, %v1011_v60 }
 0xe2a   :  { %2147 = vmatprep.mubr.msk.bf16.mxu1 %vm2307_vm1, %v2306_v15  ;;  %2146 = vmatpush3.bf16.msra.mxu1 %v2213_v53 }
 0xe2b   :  { %2157 = vmatprep.subr.bf16.mxu1 %v2306_v15 }
 0xef4   :  { %v932_v61 = vpop.f32.mrb[8].mxu1 }
 0xef5   :  { %v933_v62 = vadd.f32 %v932_v61, %v2492_v44  ;;  %v2125_v63 = vpop.f32.mrb[9].mxu1 }
 0xef6   :  { %v935_v0 = vpop.f32.mrb[10].mxu1 }
 0xef7   :  { %v936_v1 = vadd.f32 %v935_v0, %v2497_v46  ;;  %v2126_v2 = vpop.f32.mrb[11].mxu1  ;;  %v939_v3 = vsel %vm200_vm2, %v933_v62, -inf }
 0xef8   :  { %940 = vmax.xlane.f32.xlu0 %v939_v3 }
 0xef9   :  { %v942_v4 = vsel %vm200_vm2, %v936_v1, -inf }
 0xefa   :  { %943 = vmax.xlane.f32.xlu1 %v942_v4 }
 0xefc   :  { %v1054_v5 = vpop.f32.mrb[12].mxu1 }
 0xefd   :  { %v1055_v6 = vadd.f32 %v1054_v5, %v2492_v44  ;;  %v2137_v7 = vpop.f32.mrb[13].mxu1  ;;  %v1926_v5 = vld [vmem:[%s2895_s29 + $0x1] ss:$0 sm:$0xff] }
 0xefe   :  { %v1057_v8 = vpop.f32.mrb[14].mxu1 }
 0xeff   :  { %v1058_v9 = vadd.f32 %v1057_v8, %v2497_v46  ;;  %v2138_v10 = vpop.f32.mrb[15].mxu1  ;;  %v1061_v11 = vsel %vm200_vm2, %v1055_v6, -inf }
 0xf00   :  { %1062 = vmax.xlane.f32.xlu0 %v1061_v11 }
 0xf01   :  { %v1064_v12 = vsel %vm200_vm2, %v1058_v9, -inf }
 0xf04   :  { %1065 = vmax.xlane.f32.xlu0 %v1064_v12 }
 0xf0b   :  { %1084 = vrot.lane.b32.xlu1 %v2623_v55, %s2896_s25 }
 0xf85   :  { %v941_v13 = vpop.xlane.xlu0 %940 }
 0xf86   :  { %v945_v14 = vsub.f32 %v933_v62, %v941_v13 }
 0xf87   :  { %v944_v16 = vpop.xlane.xlu1 %943 }
 0xf88   :  { %v947_v31 = vmul.f32 1.442695, %v945_v14  ;;  %v946_v32 = vsub.f32 %v936_v1, %v944_v16 }
 0xf8a   :  { %2270 = vpow2.f32 %v947_v31  ;;  %v949_v44 = vmul.f32 1.442695, %v946_v32 }
 0xf8b   :  { %v1085_v43 = vpop.permute.xlu1 %1084 }
 0xf8c   :  { %2272 = vpow2.f32 %v949_v44 }
 0xf8d   :  { %v1063_v17 = vpop.xlane.xlu0 %1062 }
 0xf8e   :  { %v1067_v46 = vsub.f32 %v1055_v6, %v1063_v17 }
 0xf90   :  { %v1069_v18 = vmul.f32 1.442695, %v1067_v46 }
 0xf91   :  { %v1066_v19 = vpop.xlane.xlu0 %1065 }
 0xf92   :  { %2274 = vpow2.f32 %v1069_v18  ;;  %v1068_v20 = vsub.f32 %v1058_v9, %v1066_v19 }
 0xf94   :  { %v2271_v21 = vpop.eup %2270  ;;  %v1071_v22 = vmul.f32 1.442695, %v1068_v20 }
 0xf95   :  { %v951_v23 = vsel %vm200_vm2, %v2271_v21, 0.0 }
 0xf96   :  { %v2273_v24 = vpop.eup %2272  ;;  %2276 = vpow2.f32 %v1071_v22  ;;  %952 = vadd.xlane.f32.xlu0 %v951_v23  ;;  %v2215_v23 = vld [vmem:[%s2856_s10 + $0x18] sm:$0xff]  }
 0xf97   :  { %v954_v25 = vsel %vm200_vm2, %v2273_v24, 0.0 }
 0xf9a   :  { %955 = vadd.xlane.f32.xlu0 %v954_v25 }
 0xf9c   :  { %v2275_v26 = vpop.eup %2274 }
 0xf9d   :  { %v1073_v27 = vsel %vm200_vm2, %v2275_v26, 0.0 }
 0xf9e   :  { %1074 = vadd.xlane.f32.xlu0 %v1073_v27 }
 0xfa0   :  { %v2277_v28 = vpop.eup %2276 }
 0xfa1   :  { %v1076_v29 = vsel %vm200_vm2, %v2277_v28, 0.0 }
 0xfa2   :  { %1077 = vadd.xlane.f32.xlu0 %v1076_v29 }
 0xfb8   :  { %962 = vrot.lane.b32.xlu0 %v2623_v55, %s2897_s1 }
0x1023   :  { %v953_v30 = vpop.xlane.xlu0 %952 }
0x1024   :  { %2278 = vrcp.f32 %v953_v30 }
0x1027   :  { %v956_v33 = vpop.xlane.xlu0 %955 }
0x1028   :  { %2280 = vrcp.f32 %v956_v33 }
0x102b   :  { %v1075_v34 = vpop.xlane.xlu0 %1074 }
0x102c   :  { %2282 = vrcp.f32 %v1075_v34  ;;  %v1929_v34 = vld [vmem:[%s2857_s8 + $0x1] ss:$0 sm:$0xff] }
0x102e   :  { %v2279_v36 = vpop.eup %2278 }
0x102f   :  { %v1078_v35 = vpop.xlane.xlu0 %1077  ;;  %v959_v38 = vmul.f32 %v2279_v36, %v2271_v21 }
0x1030   :  { %2284 = vrcp.f32 %v1078_v35 }
0x1032   :  { %v2281_v37 = vpop.eup %2280 }
0x1033   :  { %v960_v39 = vmul.f32 %v2281_v37, %v2273_v24  ;;  %v963_v40 = vpop.permute.xlu0 %962 }
0x1034   :  { %2128 = vmatpush3.bf16.msra.mxu0 %v963_v40 }
0x1035   :  { %v961_v42 = vpack.c.bf16 %v960_v39, %v959_v38  ;;  %2139 = vmatprep.subr.bf16.mxu0 %v2306_v15  ;;  %v1930_v38 = vld [vmem:[%s2858_s9 + $0x1] ss:$0 sm:$0xff] }
0x1036   :  { %v2283_v48 = vpop.eup %2282 }
0x1037   :  { %2130 = vmatmul.mubr.msk.bf16.vlgmr.msra.gmra.mrb[32].mxu0 %vm200_vm2, %v961_v42  ;;  %v1081_v49 = vmul.f32 %v2283_v48, %v2275_v26  ;;  %v2216_v48 = vld [vmem:[%s2859_s12 + $0x20] sm:$0xff]  }
0x1038   :  { %2140 = vmatpush3.bf16.msra.mxu0 %v1085_v43  ;;  %2141 = vmatprep.mubr.msk.bf16.mxu0 %vm2307_vm1, %v2306_v15 }
0x1039   :  { %2151 = vmatprep.subr.bf16.mxu0 %v2306_v15 }
0x103a   :  { %v2285_v41 = vpop.eup %2284 }
0x103b   :  { %v1082_v50 = vmul.f32 %v2285_v41, %v2277_v28  ;;  %v2217_v41 = vld [vmem:[%s2859_s12 + $0x28] sm:$0xff]  }
0x103d   :  { %v1083_v51 = vpack.c.bf16 %v1082_v50, %v1081_v49  ;;  %v2218_v49 = vld [vmem:[%s2859_s12 + $0x30] sm:$0xff]   ;;  %v2219_v50 = vld [vmem:[%s2859_s12 + $0x38] sm:$0xff]  }
0x103f   :  { %2142 = vmatmul.mubr.msk.bf16.vlgmr.msra.gmra.mrb[36].mxu0 %vm200_vm2, %v1083_v51  ;;  %v1936_v51 = vld [vmem:[%s2860_s11 + $0x1] ss:$0 sm:$0xff] }
0x1040   :  { %2153 = vmatprep.mubr.msk.bf16.mxu0 %vm2307_vm1, %v2306_v15  ;;  %2152 = vmatpush3.bf16.msra.mxu0 %v2212_v52 }
0x1041   :  { %2165 = vmatprep.subr.bf16.mxu0 %v2306_v15 }
0x110a   :  { %v1002_v54 = vpop.f32.mrb[32].mxu0 }
0x110b   :  { %v2131_v55 = vpop.f32.mrb[33].mxu0 }
0x110c   :  { %v1005_v56 = vpop.f32.mrb[34].mxu0 }
0x110d   :  { %v1009_v57 = vpack.c.bf16 %v1005_v56, %v1002_v54  ;;  %v2132_v58 = vpop.f32.mrb[35].mxu0 }
0x110f   :  { %2154 = vmatmul.mubr.msk.bf16.vlgmr.msra.gmra.mrb[40].mxu0 %vm200_vm2, %v1009_v57 }
0x1110   :  { %2173 = vmatprep.mubr.msk.bf16.mxu0 %vm2307_vm1, %v2306_v15  ;;  %2166 = vmatpush3.bf16.msra.mxu0 %v2216_v48 }
0x1111   :  { %2167 = vmatprep.subr.bf16.mxu0 %v2306_v15 }
0x1112   :  { %v1124_v59 = vpop.f32.mrb[36].mxu0 }
0x1113   :  { %v2143_v60 = vpop.f32.mrb[37].mxu0 }
0x1114   :  { %v1127_v61 = vpop.f32.mrb[38].mxu0  ;;  %2168 = vmatpush3.bf16.msra.mxu0 %v2217_v41 }
0x1115   :  { %v1131_v62 = vpack.c.bf16 %v1127_v61, %v1124_v59  ;;  %v2144_v63 = vpop.f32.mrb[39].mxu0  ;;  %2169 = vmatprep.subr.bf16.mxu0 %v2306_v15 }
0x1117   :  { %2148 = vmatmul.mubr.msk.bf16.vlgmr.msra.gmra.mrb[16].mxu1 %vm200_vm2, %v1131_v62 }
0x1118   :  { %2161 = vmatprep.mubr.msk.bf16.mxu1 %vm2307_vm1, %v2306_v15  ;;  %2170 = vmatpush3.bf16.msra.mxu0 %v2218_v49 }
0x1119   :  { %2171 = vmatprep.subr.bf16.mxu0 %v2306_v15 }
0x111c   :  { %2172 = vmatpush3.bf16.msra.mxu0 %v2219_v50 }
0x11e2   :  { %v1225_v0 = vpop.f32.mrb[40].mxu0 }
0x11e3   :  { %v2155_v1 = vpop.f32.mrb[41].mxu0 }
0x11e4   :  { %v1228_v2 = vpop.f32.mrb[42].mxu0 }
0x11e5   :  { %v2156_v3 = vpop.f32.mrb[43].mxu0 }
0x11ea   :  { %v1175_v4 = vpop.f32.mrb[16].mxu1 }
0x11eb   :  { %v1226_v6 = vadd.f32 %v1225_v0, %v1175_v4  ;;  %v2149_v7 = vpop.f32.mrb[17].mxu1 }
0x11ec   :  { %v1178_v8 = vpop.f32.mrb[18].mxu1 }
0x11ed   :  { %v1240_v9 = vadd.f32 %v1926_v5, %v1226_v6  ;;  %v1229_v10 = vadd.f32 %v1228_v2, %v1178_v8  ;;  %v2150_v11 = vpop.f32.mrb[19].mxu1 }
0x11ef   :  { %v1241_v12 = vadd.f32 %v1926_v5, %v1229_v10  ;;  %v1242_v13 = vadd.f32 %v1240_v9, %v2611_v45 }
0x11f1   :  { %v1248_v14 = vsel %vm78_vm0, %v1242_v13, 0.0  ;;  %v1243_v16 = vadd.f32 %v1241_v12, %v2613_v47  ;;  %v2214_v47 = vld [vmem:[%s2856_s10 + $0x10] sm:$0xff]  }
0x11f2   :  { %1249 = vadd.xlane.f32.xlu0 %v1248_v14  ;;  %2158 = vmatpush3.bf16.msra.mxu1 %v2214_v47 }
0x11f3   :  { %v1251_v31 = vsel %vm78_vm0, %v1243_v16, 0.0  ;;  %2159 = vmatprep.subr.bf16.mxu1 %v2306_v15 }
0x11f4   :  { %1252 = vadd.xlane.f32.xlu1 %v1251_v31 }
0x11f6   :  { %2160 = vmatpush3.bf16.msra.mxu1 %v2215_v23 }
0x11f7   :  { %2177 = vmatprep.subr.bf16.mxu1 %v2306_v15 }
0x127f   :  { %v1250_v32 = vpop.xlane.xlu0 %1249 }
0x1280   :  { %v1254_v44 = vmul.f32 0.03125, %v1250_v32 }
0x1281   :  { %v1253_v17 = vpop.xlane.xlu1 %1252 }
0x1282   :  { %v1256_v46 = vsub.f32 %v1242_v13, %v1254_v44  ;;  %v1255_v18 = vmul.f32 0.03125, %v1253_v17  ;;  %v1949_v13 = vld [vmem:[%s2861_s13 + $0x1] ss:$0 sm:$0xff] }
0x1284   :  { %v1257_v19 = vsub.f32 %v1243_v16, %v1255_v18  ;;  %v1258_v20 = vmul.f32 %v1256_v46, %v1256_v46 }
0x1286   :  { %v1260_v21 = vsel %vm78_vm0, %v1258_v20, 0.0  ;;  %v1259_v22 = vmul.f32 %v1257_v19, %v1257_v19 }
0x1287   :  { %1261 = vadd.xlane.f32.xlu0 %v1260_v21 }
0x1288   :  { %v1263_v45 = vsel %vm78_vm0, %v1259_v22, 0.0 }
0x128b   :  { %1264 = vadd.xlane.f32.xlu0 %v1263_v45 }
0x1314   :  { %v1262_v24 = vpop.xlane.xlu0 %1261 }
0x1315   :  { %v1266_v25 = vmul.f32 0.03125, %v1262_v24 }
0x1317   :  { %v1268_v26 = vadd.f32 1e-12, %v1266_v25 }
0x1318   :  { %v1265_v27 = vpop.xlane.xlu0 %1264 }
0x1319   :  { %2286 = vrsqrt.f32 %v1268_v26  ;;  %v1267_v28 = vmul.f32 0.03125, %v1265_v27 }
0x131b   :  { %v1269_v29 = vadd.f32 1e-12, %v1267_v28 }
0x131d   :  { %2288 = vrsqrt.f32 %v1269_v29  ;;  %v2220_v29 = vld [vmem:[%s2864_s16] sm:$0xff]  }
0x1323   :  { %v2287_v30 = vpop.eup %2286 }
0x1324   :  { %v1272_v33 = vmul.f32 %v2287_v30, %v1256_v46  ;;  %v2221_v30 = vld [vmem:[%s2864_s16 + $0x8] sm:$0xff]  }
0x1326   :  { %v1280_v36 = vmul.f32 %v1929_v34, %v1272_v33 }
0x1327   :  { %v2289_v35 = vpop.eup %2288 }
0x1328   :  { %v1273_v37 = vmul.f32 %v2289_v35, %v1257_v19  ;;  %v1288_v40 = vadd.f32 %v1930_v38, %v1280_v36 }
0x132a   :  { %v1281_v39 = vmul.f32 %v1929_v34, %v1273_v37 }
0x132c   :  { %v1289_v42 = vadd.f32 %v1930_v38, %v1281_v39 }
0x132e   :  { %v1295_v43 = vpack.c.bf16 %v1289_v42, %v1288_v40 }
0x1330   :  { %2162 = vmatmul.mubr.msk.bf16.vlgmr.msra.gmra.mrb[20].mxu1 %vm78_vm0, %v1295_v43 }
0x1331   :  { %2181 = vmatprep.mubr.msk.bf16.mxu1 %vm2307_vm1, %v2306_v15  ;;  %2178 = vmatpush3.bf16.msra.mxu1 %v2220_v29 }
0x1332   :  { %2179 = vmatprep.subr.bf16.mxu1 %v2306_v15  ;;  %v1958_v15 = vld [vmem:[%s2863_s15 + $0x1] ss:$0 sm:$0xff] }
0x1335   :  { %2180 = vmatpush3.bf16.msra.mxu1 %v2221_v30 }
0x1403   :  { %v1353_v52 = vpop.f32.mrb[20].mxu1 }
0x1404   :  { %v1354_v53 = vadd.f32 %v1936_v51, %v1353_v52  ;;  %v2163_v54 = vpop.f32.mrb[21].mxu1 }
0x1405   :  { %v1356_v55 = vpop.f32.mrb[22].mxu1 }
0x1406   :  { %v1362_v56 = vmul.f32 0.044715, %v1354_v53  ;;  %v1357_v57 = vadd.f32 %v1936_v51, %v1356_v55  ;;  %v2164_v58 = vpop.f32.mrb[23].mxu1  ;;  %v1360_v7 = vmul.f32 0.5, %v1354_v53 }
0x1408   :  { %v1364_v59 = vmul.f32 %v1362_v56, %v1354_v53  ;;  %v1363_v60 = vmul.f32 0.044715, %v1357_v57  ;;  %v1361_v8 = vmul.f32 0.5, %v1357_v57 }
0x140a   :  { %v1366_v61 = vmul.f32 %v1364_v59, %v1354_v53  ;;  %v1365_v62 = vmul.f32 %v1363_v60, %v1357_v57 }
0x140c   :  { %v1368_v63 = vadd.f32 %v1366_v61, %v1354_v53  ;;  %v1367_v0 = vmul.f32 %v1365_v62, %v1357_v57  ;;  %v1959_v53 = vld [vmem:[%s2866_s17] ss:$0 sm:$0xff] }
0x140e   :  { %v1370_v1 = vmul.f32 0.7978846, %v1368_v63  ;;  %v1369_v2 = vadd.f32 %v1367_v0, %v1357_v57 }
0x1410   :  { %2290 = vtanh.f32 %v1370_v1  ;;  %v1371_v3 = vmul.f32 0.7978846, %v1369_v2 }
0x1412   :  { %2292 = vtanh.f32 %v1371_v3 }
0x141a   :  { %v2291_v4 = vpop.eup %2290 }
0x141b   :  { %v1374_v5 = vadd.f32 1.0, %v2291_v4 }
0x141c   :  { %v2293_v6 = vpop.eup %2292 }
0x141d   :  { %v1375_v9 = vadd.f32 1.0, %v2293_v6  ;;  %v1376_v10 = vmul.f32 %v1374_v5, %v1360_v7 }
0x141f   :  { %v1377_v11 = vmul.f32 %v1375_v9, %v1361_v8 }
0x1421   :  { %v1387_v12 = vpack.c.bf16 %v1377_v11, %v1376_v10 }
0x1423   :  { %2174 = vmatmul.mubr.msk.bf16.vlgmr.msra.gmra.mrb[44].mxu0 %vm722_vm3, %v1387_v12 }
0x14f6   :  { %v1457_v14 = vpop.f32.mrb[44].mxu0 }
0x14f7   :  { %v1458_v16 = vadd.f32 %v1949_v13, %v1457_v14  ;;  %v2175_v31 = vpop.f32.mrb[45].mxu0 }
0x14f8   :  { %v1460_v32 = vpop.f32.mrb[46].mxu0  ;;  %v2222_v31 = vld [vmem:[%s2867_s20 + $0x40] sm:$0xff]  }
0x14f9   :  { %v1461_v44 = vadd.f32 %v1949_v13, %v1460_v32  ;;  %v2176_v17 = vpop.f32.mrb[47].mxu0  ;;  %v1464_v46 = vadd.f32 %v1458_v16, %v1288_v40  ;;  %v1957_v40 = vld [vmem:[%s2862_s14 + $0x1] ss:$0 sm:$0xff]  ;;  %2185 = vmatprep.subr.msk.bf16.mxu1 %vm78_vm0, %v2222_v31 }
0x14fa   :  { %v2223_v32 = vld [vmem:[%s2867_s20] sm:$0xff]  }
0x14fb   :  { %v1470_v18 = vsel %vm78_vm0, %v1464_v46, 0.0  ;;  %v1465_v19 = vadd.f32 %v1461_v44, %v1289_v42  ;;  %v2224_v44 = vld [vmem:[%s2867_s20 + $0x48] sm:$0xff]   ;;  %v1773_v17 = vsel %vm78_vm0, %v2223_v32, 0 }
0x14fc   :  { %1471 = vadd.xlane.f32.xlu0 %v1470_v18 }
0x14fd   :  { %v1473_v20 = vsel %vm78_vm0, %v1465_v19, 0.0 }
0x14fe   :  { %1474 = vadd.xlane.f32.xlu1 %v1473_v20  ;;  %v2227_v20 = vld [vmem:[%s2867_s20 + $0x10] sm:$0xff]  }
0x1589   :  { %v1472_v21 = vpop.xlane.xlu0 %1471 }
0x158a   :  { %v1476_v22 = vmul.f32 0.03125, %v1472_v21  ;;  %v1779_v21 = vsel %vm78_vm0, %v2227_v20, 0 }
0x158b   :  { %v1475_v45 = vpop.xlane.xlu1 %1474 }
0x158c   :  { %v1478_v47 = vsub.f32 %v1464_v46, %v1476_v22  ;;  %v1477_v23 = vmul.f32 0.03125, %v1475_v45  ;;  %v2225_v46 = vld [vmem:[%s2867_s20 + $0x8] sm:$0xff]   ;;  %v2228_v22 = vld [vmem:[%s2867_s20 + $0x58] sm:$0xff]  }
0x158d   :  { %v1776_v18 = vsel %vm78_vm0, %v2225_v46, 0  ;;  %v2229_v45 = vld [vmem:[%s2867_s20 + $0x18] sm:$0xff]  }
0x158e   :  { %v1479_v24 = vsub.f32 %v1465_v19, %v1477_v23  ;;  %v1480_v25 = vmul.f32 %v1478_v47, %v1478_v47  ;;  %v2226_v19 = vld [vmem:[%s2867_s20 + $0x50] sm:$0xff]   ;;  %v2230_v23 = vld [vmem:[%s2867_s20 + $0x60] sm:$0xff]  }
0x1590   :  { %v1482_v26 = vsel %vm78_vm0, %v1480_v25, 0.0  ;;  %v1481_v27 = vmul.f32 %v1479_v24, %v1479_v24 }
0x1591   :  { %1483 = vadd.xlane.f32.xlu0 %v1482_v26 }
0x1592   :  { %v1485_v28 = vsel %vm78_vm0, %v1481_v27, 0.0 }
0x1593   :  { %1486 = vadd.xlane.f32.xlu1 %v1485_v28 }
0x161e   :  { %v1484_v33 = vpop.xlane.xlu0 %1483 }
0x161f   :  { %v1488_v34 = vmul.f32 0.03125, %v1484_v33 }
0x1620   :  { %v1487_v35 = vpop.xlane.xlu1 %1486 }
0x1621   :  { %v1490_v36 = vadd.f32 1e-12, %v1488_v34  ;;  %v1489_v37 = vmul.f32 0.03125, %v1487_v35 }
0x1623   :  { %2294 = vrsqrt.f32 %v1490_v36  ;;  %v1491_v38 = vadd.f32 1e-12, %v1489_v37 }
0x1625   :  { %2296 = vrsqrt.f32 %v1491_v38  ;;  %v2232_v38 = vld [vmem:[%s2867_s20 + $0x68] sm:$0xff]  }
0x162d   :  { %v2295_v39 = vpop.eup %2294 }
0x162e   :  { %v1494_v42 = vmul.f32 %v2295_v39, %v1478_v47  ;;  %v1782_v47 = vsel %vm78_vm0, %v2229_v45, 0  ;;  %v2233_v39 = vld [vmem:[%s2867_s20 + $0x28] sm:$0xff]  }
0x162f   :  { %v2297_v43 = vpop.eup %2296 }
0x1630   :  { %v1502_v48 = vmul.f32 %v1957_v40, %v1494_v42  ;;  %v1495_v41 = vmul.f32 %v2297_v43, %v1479_v24  ;;  %v2231_v24 = vld [vmem:[%s2867_s20 + $0x20] sm:$0xff]   ;;  %v2234_v42 = vld [vmem:[%s2867_s20 + $0x70] sm:$0xff]  }
0x1631   :  { %v1785_v25 = vsel %vm78_vm0, %v2231_v24, 0  ;;  %v2235_v43 = vld [vmem:[%s2867_s20 + $0x30] sm:$0xff]  }
0x1632   :  { %v1503_v49 = vmul.f32 %v1957_v40, %v1495_v41  ;;  %v1510_v50 = vadd.f32 %v1958_v15, %v1502_v48  ;;  %v1788_v40 = vsel %vm78_vm0, %v2233_v39, 0  ;;  %v2236_v48 = vld [vmem:[%s2867_s20 + $0x78] sm:$0xff]  }
0x1633   :  { %v2237_v41 = vld [vmem:[%s2867_s20 + $0x38] sm:$0xff]  }
0x1634   :  { %v1511_v51 = vadd.f32 %v1958_v15, %v1503_v49  ;;  %1512 = vst.msk [vmem:[%s2865_s22] sm:$0xff] %vm78_vm0, %v1510_v50  ;;  %v1791_v15 = vsel %vm78_vm0, %v2235_v43, 0  ;;  %v1794_v49 = vsel %vm78_vm0, %v2237_v41, 0 }
0x1636   :  { %1513 = vst.msk [vmem:[%s2865_s22 + $0x8] sm:$0xff] %vm78_vm0, %v1511_v51  ;;  %v1518_v52 = vpack.c.bf16 %v1511_v51, %v1510_v50 }
0x1638   :  { %2182 = vmatmul.mubr.msk.bf16.vlgmr.msra.gmra.mrb[24].mxu1 %vm78_vm0, %v1518_v52 }
0x1639   :  { %2032 = vmatpush3.bf16.xpose.msra.mxu1 %v1773_v17 }
0x163a   :  { %2186 = vmatprep.subr.msk.bf16.mxu1 %vm78_vm0, %v2224_v44 }
0x1641   :  { %2034 = vmatpush3.bf16.xpose.msra.mxu1 %v1776_v18 }
0x1642   :  { %2187 = vmatprep.subr.msk.bf16.mxu1 %vm78_vm0, %v2226_v19 }
0x1649   :  { %2036 = vmatpush3.bf16.xpose.msra.mxu1 %v1779_v21 }
0x164a   :  { %2188 = vmatprep.subr.msk.bf16.mxu1 %vm78_vm0, %v2228_v22 }
0x1651   :  { %2038 = vmatpush3.bf16.xpose.msra.mxu1 %v1782_v47 }
0x1652   :  { %2189 = vmatprep.subr.msk.bf16.mxu1 %vm78_vm0, %v2230_v23 }
0x1659   :  { %2040 = vmatpush3.bf16.xpose.msra.mxu1 %v1785_v25 }
0x165a   :  { %2190 = vmatprep.subr.msk.bf16.mxu1 %vm78_vm0, %v2232_v38 }
0x1661   :  { %2042 = vmatpush3.bf16.xpose.msra.mxu1 %v1788_v40 }
0x1662   :  { %2191 = vmatprep.subr.msk.bf16.mxu1 %vm78_vm0, %v2234_v42 }
0x1669   :  { %2044 = vmatpush3.bf16.xpose.msra.mxu1 %v1791_v15 }
0x166a   :  { %2192 = vmatprep.subr.msk.bf16.mxu1 %vm78_vm0, %v2236_v48 }
0x1671   :  { %2046 = vmatpush3.bf16.xpose.msra.mxu1 %v1794_v49 }
0x170b   :  { %v1575_v54 = vpop.f32.mrb[24].mxu1 }
0x170c   :  { %v1576_v55 = vadd.f32 %v1959_v53, %v1575_v54  ;;  %v2183_v56 = vpop.f32.mrb[25].mxu1 }
0x170d   :  { %v1578_v57 = vpop.f32.mrb[26].mxu1 }
0x170e   :  { %v1584_v58 = vmul.f32 0.044715, %v1576_v55  ;;  %v1579_v59 = vadd.f32 %v1959_v53, %v1578_v57  ;;  %v2184_v60 = vpop.f32.mrb[27].mxu1  ;;  %v1582_v7 = vmul.f32 0.5, %v1576_v55  ;;  %v1963_v57 = vld [vmem:[%s2868_s18] ss:$0 sm:$0xff] }
0x1710   :  { %v1585_v61 = vmul.f32 0.044715, %v1579_v59  ;;  %v1586_v62 = vmul.f32 %v1584_v58, %v1576_v55  ;;  %v1583_v11 = vmul.f32 0.5, %v1579_v59 }
0x1712   :  { %v1588_v63 = vmul.f32 %v1586_v62, %v1576_v55  ;;  %v1587_v0 = vmul.f32 %v1585_v61, %v1579_v59  ;;  %v1964_v62 = vld [vmem:[%s2869_s19] ss:$0 sm:$0xff] }
0x1714   :  { %v1590_v1 = vadd.f32 %v1588_v63, %v1576_v55  ;;  %v1589_v2 = vmul.f32 %v1587_v0, %v1579_v59 }
0x1716   :  { %v1592_v3 = vmul.f32 0.7978846, %v1590_v1  ;;  %v1591_v4 = vadd.f32 %v1589_v2, %v1579_v59 }
0x1718   :  { %2298 = vtanh.f32 %v1592_v3  ;;  %v1593_v5 = vmul.f32 0.7978846, %v1591_v4  ;;  %v1679_v3 = vlaneseq }
0x171a   :  { %2300 = vtanh.f32 %v1593_v5  ;;  %v1680_v4 = vshrl.u32 %v1679_v3, 7 }
0x171c   :  { %v1681_v5 = vsub.s32 0, %v1680_v4 }
0x1722   :  { %v2299_v6 = vpop.eup %2298 }
0x1723   :  { %v1596_v8 = vadd.f32 1.0, %v2299_v6  ;;  %v1677_v6 = vld [vmem:[%s2870_s21] sm:$0x3] }
0x1724   :  { %v2301_v9 = vpop.eup %2300 }
0x1725   :  { %v1598_v10 = vmul.f32 %v1596_v8, %v1582_v7  ;;  %v1597_v12 = vadd.f32 1.0, %v2301_v9  ;;  %v1685_v7 = vsub.s32 1, %v1680_v4  ;;  %v1682_v8 = vrot.slane %v1677_v6, %v1681_v5 }
0x1727   :  { %v1602_v13 = vsel %vm78_vm0, %v1598_v10, 0.0  ;;  %v1599_v14 = vmul.f32 %v1597_v12, %v1583_v11  ;;  %v1686_v9 = vrot.slane %v1677_v6, %v1685_v7 }
0x1728   :  { %1603 = vadd.xlane.f32.xlu0 %v1602_v13 }
0x1729   :  { %v1605_v16 = vsel %vm78_vm0, %v1599_v14, 0.0 }
0x172a   :  { %1606 = vadd.xlane.f32.xlu1 %v1605_v16 }
0x17b5   :  { %v1604_v26 = vpop.xlane.xlu0 %1603 }
0x17b6   :  { %v1608_v27 = vmul.f32 0.03125, %v1604_v26 }
0x17b7   :  { %v1607_v28 = vpop.xlane.xlu1 %1606 }
0x17b8   :  { %v1610_v29 = vsub.f32 %v1598_v10, %v1608_v27  ;;  %v1609_v30 = vmul.f32 0.03125, %v1607_v28 }
0x17ba   :  { %v1611_v33 = vsub.f32 %v1599_v14, %v1609_v30  ;;  %v1612_v34 = vmul.f32 %v1610_v29, %v1610_v29 }
0x17bc   :  { %v1614_v35 = vsel %vm78_vm0, %v1612_v34, 0.0  ;;  %v1613_v36 = vmul.f32 %v1611_v33, %v1611_v33 }
0x17bd   :  { %1615 = vadd.xlane.f32.xlu0 %v1614_v35 }
0x17be   :  { %v1617_v37 = vsel %vm78_vm0, %v1613_v36, 0.0 }
0x17bf   :  { %1618 = vadd.xlane.f32.xlu1 %v1617_v37 }
0x184a   :  { %v1616_v50 = vpop.xlane.xlu0 %1615 }
0x184b   :  { %v1620_v51 = vmul.f32 0.03125, %v1616_v50 }
0x184c   :  { %v1619_v52 = vpop.xlane.xlu1 %1618 }
0x184d   :  { %v1622_v53 = vadd.f32 1e-12, %v1620_v51  ;;  %v1621_v54 = vmul.f32 0.03125, %v1619_v52 }
0x184f   :  { %2302 = vrsqrt.f32 %v1622_v53  ;;  %v1623_v55 = vadd.f32 1e-12, %v1621_v54 }
0x1851   :  { %2304 = vrsqrt.f32 %v1623_v55 }
0x1859   :  { %v2303_v56 = vpop.eup %2302 }
0x185a   :  { %v1626_v58 = vmul.f32 %v2303_v56, %v1610_v29 }
0x185b   :  { %v2305_v59 = vpop.eup %2304 }
0x185c   :  { %v1627_v60 = vmul.f32 %v2305_v59, %v1611_v33  ;;  %v1634_v61 = vmul.f32 %v1963_v57, %v1626_v58 }
0x185e   :  { %v1635_v63 = vmul.f32 %v1963_v57, %v1627_v60  ;;  %v1642_v0 = vadd.f32 %v1964_v62, %v1634_v61 }
0x1860   :  { %v1643_v1 = vadd.f32 %v1964_v62, %v1635_v63 }
0x1862   :  { %v1676_v2 = vpack.c.bf16 %v1643_v1, %v1642_v0 }
0x1864   :  { %2047 = vmatprep.mubr.msk.bf16.mxu1 %vm78_vm0, %v1676_v2 }
0x1865   :  { %2048 = vmatmul.mubr.msk.bf16.vlgmr.msra.gmra.mrb[28].mxu1 %vm78_vm0, %v1676_v2 }
0x1938   :  { %v1854_v10 = vpop.f32.mrb[28].mxu1 }
0x1939   :  { %v1855_v11 = vadd.f32 %v1854_v10, %v1682_v8  ;;  %v1856_v12 = vpop.f32.mrb[29].mxu1 }
0x193a   :  { %v1857_v13 = vadd.f32 %v1856_v12, %v1686_v9  ;;  %v1858_v14 = vpop.f32.mrb[30].mxu1 }
0x193b   :  { %1863 = vst [vmem:[%s2871_s23] sm:$0xff] %v1855_v11  ;;  %v1859_v16 = vadd.f32 %v1858_v14, %v1682_v8  ;;  %v1860_v31 = vpop.f32.mrb[31].mxu1 }
0x193c   :  { %1864 = vst [vmem:[%s2871_s23 + $0x8] sm:$0xff] %v1857_v13  ;;  %v1861_v32 = vadd.f32 %v1860_v31, %v1686_v9 }
0x193d   :  { %1865 = vst [vmem:[%s2871_s23 + $0x10] sm:$0xff] %v1859_v16 }
0x193e   :  { %1866 = vst [vmem:[%s2871_s23 + $0x18] sm:$0xff] %v1861_v32 }

</bundles_post_ra>
